<compile_context>
chip_gen: v7x
topology: tpu7x:2x2x1
jax: 0.10.0
libtpu: 0.0.40
codegen_flags: <defaults>
</compile_context>

<pallas_src>
import functools

import numpy as np
import jax
import jax.numpy as jnp
from jax import lax
from jax.experimental import pallas as pl
from jax.experimental.pallas import tpu as pltpu

WIN = 9                       # NCC window (self.win = [9, 9])
RAD = WIN // 2                # "same" conv padding = 4
WIN_SIZE = float(WIN * WIN)   # np.prod(self.win) = 81
EPS = 1e-5


def _round_up(x, m):
    return ((x + m - 1) // m) * m


def _lane_tile(W):
    """Per-slice lane width Wp (>= W + RAD zero guard) and slices per 128-lane pack."""
    need = W + RAD
    if need <= 128:
        for d in (8, 16, 32, 64, 128):
            if d >= need:
                return d, 128 // d
    return _round_up(need, 128), 1


# ----------------------------------------------------------------------------
# NCC kernel: one grid step = one lane-packed group of P slices.
# Inputs are pre-padded in the wrapper:
#   rows:  RAD zero rows on top, >= RAD below (Hp = round_up(H + 8, 8))
#   lanes: packed layout [slice0 | slice1 | ...] of width PW, plus RAD zero
#          guard lanes on the global left/right (total width PW + 2*RAD).
# ----------------------------------------------------------------------------
def _ncc_kernel(i_ref, j_ref, lmask_ref, o_ref, *, h, pw):
    Ii = i_ref[...]                      # (Hp, pw + 8) f32
    Ji = j_ref[...]

    def hsum9(x):
        # 9-tap box sum along lanes via 3-tap-of-3-tap tree of static slices.
        # x: (rows, pw + 8) -> (rows, pw);  out[:, c] = sum_{k=-4..4} packed[:, c+k]
        r = x.shape[0]
        t = (lax.slice(x, (0, 0), (r, pw + 6))
             + lax.slice(x, (0, 1), (r, pw + 7))
             + lax.slice(x, (0, 2), (r, pw + 8)))
        return (lax.slice(t, (0, 0), (r, pw))
                + lax.slice(t, (0, 3), (r, pw + 3))
                + lax.slice(t, (0, 6), (r, pw + 6)))

    def vsum9(x):
        # 9-tap box sum along rows on the pre-padded rows (4 zero rows on top).
        # x: (Hp, pw) -> (h, pw)
        t = (lax.slice(x, (0, 0), (h + 6, pw))
             + lax.slice(x, (1, 0), (h + 7, pw))
             + lax.slice(x, (2, 0), (h + 8, pw)))
        return (lax.slice(t, (0, 0), (h, pw))
                + lax.slice(t, (3, 0), (h + 3, pw))
                + lax.slice(t, (6, 0), (h + 6, pw)))

    def box9(x):
        return vsum9(hsum9(x))

    I_sum = box9(Ii)
    J_sum = box9(Ji)
    I2_sum = box9(Ii * Ii)
    J2_sum = box9(Ji * Ji)
    IJ_sum = box9(Ii * Ji)

    inv_win = 1.0 / WIN_SIZE             # constant divide -> multiply
    u_I = I_sum * inv_win
    u_J = J_sum * inv_win

    cross = IJ_sum - u_J * I_sum - u_I * J_sum + u_I * u_J * WIN_SIZE
    I_var = I2_sum - 2.0 * u_I * I_sum + u_I * u_I * WIN_SIZE
    J_var = J2_sum - 2.0 * u_J * J_sum + u_J * u_J * WIN_SIZE

    # exact divide so results match the f32 reference
    cc = cross * cross / (I_var * J_var + EPS)

    # lmask folds the valid-lane mask and the 1/(H*W) mean scale.
    col = jnp.sum(cc * lmask_ref[...], axis=0, keepdims=True)      # (1, pw)
    o_ref[...] = col.reshape(1, 1, pw)                             # lane-dense store


def ncc_per_slice_mean(y_true, y_pred):
    """y_true, y_pred: (B, C, H, W) -> (B, C) per-slice mean of local cc."""
    B, C, H, W = y_true.shape
    N = B * C
    Wp, P = _lane_tile(W)                # per-slice lane block / slices per pack
    PW = Wp * P
    Hp = _round_up(H + 2 * RAD, 8)       # 4-row halo top, >=4 bottom
    NG = -(-N // P)                      # packed groups
    NP = NG * P
    PWp = PW + 2 * RAD                   # global lane halo for the slice tree

    def pack(x):
        xp = x.reshape(N, H, W).astype(jnp.float32)
        xp = jnp.pad(xp, ((0, NP - N), (RAD, Hp - H - RAD), (0, Wp - W)))
        xp = xp.reshape(NG, P, Hp, Wp).transpose(0, 2, 1, 3).reshape(NG * Hp, PW)
        return jnp.pad(xp, ((0, 0), (RAD, RAD)))                   # (NG*Hp, PW+8)

    I = pack(y_true)
    J = pack(y_pred)

    lm = np.zeros((1, PW), np.float32)
    for p in range(P):
        lm[0, p * Wp:p * Wp + W] = 1.0 / float(H * W)
    lmask = jnp.asarray(lm)

    out = pl.pallas_call(
        functools.partial(_ncc_kernel, h=H, pw=PW),
        out_shape=jax.ShapeDtypeStruct((NG, 1, PW), jnp.float32),
        grid_spec=pltpu.PrefetchScalarGridSpec(
            num_scalar_prefetch=0,
            grid=(NG,),
            in_specs=[
                pl.BlockSpec((Hp, PWp), lambda n: (n, 0)),
                pl.BlockSpec((Hp, PWp), lambda n: (n, 0)),
                pl.BlockSpec((1, PW), lambda n: (0, 0)),
            ],
            out_specs=pl.BlockSpec((1, 1, PW), lambda n: (n, 0, 0)),
        ),
        compiler_params=pltpu.CompilerParams(
            dimension_semantics=("parallel",)),
    )(I, J, lmask)

    # tiny wrapper-side segmented finish: per-slice means from the column sums
    per_slice = out[:, 0, :].reshape(NG, P, Wp).sum(axis=-1)       # (NG, P)
    return per_slice.reshape(NG * P)[:N].reshape(B, C)


def ncc_loss(y_true, y_pred, are_selected):
    """Mirrors NCC.forward: masked (selected-channel) mean of per-slice cc means."""
    B = y_true.shape[0]
    means = ncc_per_slice_mean(y_true, y_pred)                     # (B, C)
    sel = are_selected.astype(jnp.float32)
    per_batch = jnp.sum(means * sel, axis=1) / jnp.sum(sel, axis=1)
    return -jnp.sum(per_batch) / B


# ----------------------------------------------------------------------------
# Grad kernel (memory-trivial): per-(b,c) slice squared/abs finite differences.
# ----------------------------------------------------------------------------
def _grad_kernel(d_ref, sdx_ref, sdy_ref, *, l2):
    x = d_ref[0]                                   # (H, W) f32
    dy = x[1:, :] - x[:-1, :]
    dx = x[:, 1:] - x[:, :-1]
    if l2:
        dy = dy * dy
        dx = dx * dx
    else:
        dy = jnp.abs(dy)
        dx = jnp.abs(dx)
    sdx_ref[...] = jnp.full((1, 1, 1), jnp.sum(dx), dtype=sdx_ref.dtype)
    sdy_ref[...] = jnp.full((1, 1, 1), jnp.sum(dy), dtype=sdy_ref.dtype)


def grad_loss(dvf, *, penalty='l2', loss_mult=None):
    Bd, Cd, H, W = dvf.shape
    N2 = Bd * Cd
    x = dvf.reshape(N2, H, W).astype(jnp.float32)
    sdx, sdy = pl.pallas_call(
        functools.partial(_grad_kernel, l2=(penalty == 'l2')),
        out_shape=(jax.ShapeDtypeStruct((N2, 1, 1), jnp.float32),
                   jax.ShapeDtypeStruct((N2, 1, 1), jnp.float32)),
        grid_spec=pltpu.PrefetchScalarGridSpec(
            num_scalar_prefetch=0,
            grid=(N2,),
            in_specs=[pl.BlockSpec((1, H, W), lambda n: (n, 0, 0))],
            out_specs=(pl.BlockSpec((1, 1, 1), lambda n: (n, 0, 0)),
                       pl.BlockSpec((1, 1, 1), lambda n: (n, 0, 0))),
        ),
        compiler_params=pltpu.CompilerParams(
            dimension_semantics=("parallel",)),
    )(x)
    mean_dx = jnp.sum(sdx) / float(N2 * H * (W - 1))
    mean_dy = jnp.sum(sdy) / float(N2 * (H - 1) * W)
    d = (mean_dx + mean_dy) * 0.5
    if loss_mult is not None:
        d = d * loss_mult
    return d


# ----------------------------------------------------------------------------
# NCCWithGrad forward (bidir=True branch).
# ----------------------------------------------------------------------------
def ncc_with_grad_forward(warped_moving, fixed, warped_fixed, moving,
                          are_selected, fwd_dvf, bwd_dvf,
                          *, int_downsize=2, weight=0.01, penalty='l2'):
    # losses = [NCC, NCC, Grad, Grad]; weights = [0.5, 0.5, 0.5*w, 0.5*w]
    l0 = 0.5 * ncc_loss(warped_moving, fixed, are_selected)
    l1 = 0.5 * ncc_loss(warped_fixed, moving, are_selected)
    g0 = (0.5 * weight) * grad_loss(fwd_dvf, penalty=penalty, loss_mult=int_downsize)
    g1 = (0.5 * weight) * grad_loss(bwd_dvf, penalty=penalty, loss_mult=int_downsize)
    total = l0 + l1 + g0 + g1
    return total, l0 + l1, g0 + g1


# ----------------------------------------------------------------------------
# Pure-JAX references (exact f32 box filter, plain jnp Grad) for validation.
# ----------------------------------------------------------------------------
def _box_filter_ref(x):
    # x: (C, 1, H, W); 9x9 "same" sum filter done with f32 adds (no MXU conv,
    # so the reference keeps full f32 precision on TPU).
    C, _, H, W = x.shape
    xp = jnp.pad(x, ((0, 0), (0, 0), (RAD, RAD), (RAD, RAD)))
    out = jnp.zeros_like(x)
    for di in range(WIN):
        for dj in range(WIN):
            out = out + lax.slice(xp, (0, 0, di, dj), (C, 1, di + H, dj + W))
    return out


def _ncc_loss_ref(y_true, y_pred, are_selected):
    B = y_true.shape[0]
    loss = 0.0
    for b in range(B):
        Ii = y_true[b][:, None].astype(jnp.float32)
        Ji = y_pred[b][:, None].astype(jnp.float32)
        I_sum, J_sum = _box_filter_ref(Ii), _box_filter_ref(Ji)
        I2_sum = _box_filter_ref(Ii * Ii)
        J2_sum = _box_filter_ref(Ji * Ji)
        IJ_sum = _box_filter_ref(Ii * Ji)
        u_I, u_J = I_sum / WIN_SIZE, J_sum / WIN_SIZE
        cross = IJ_sum - u_J * I_sum - u_I * J_sum + u_I * u_J * WIN_SIZE
        I_var = I2_sum - 2 * u_I * I_sum + u_I * u_I * WIN_SIZE
        J_var = J2_sum - 2 * u_J * J_sum + u_J * u_J * WIN_SIZE
        cc = cross * cross / (I_var * J_var + EPS)
        means = jnp.mean(cc, axis=(1, 2, 3))
        sel = are_selected[b].astype(jnp.float32)
        loss = loss - jnp.sum(means * sel) / jnp.sum(sel)
    return loss / B


def _grad_loss_ref(dvf, penalty, loss_mult):
    dy = jnp.abs(dvf[:, :, 1:, :] - dvf[:, :, :-1, :])
    dx = jnp.abs(dvf[:, :, :, 1:] - dvf[:, :, :, :-1])
    if penalty == 'l2':
        dy = dy * dy
        dx = dx * dx
    d = (jnp.mean(dx) + jnp.mean(dy)) / 2
    if loss_mult is not None:
        d = d * loss_mult
    return d


def _forward_ref(warped_moving, fixed, warped_fixed, moving, are_selected,
                 fwd_dvf, bwd_dvf, *, int_downsize, weight, penalty):
    l0 = 0.5 * _ncc_loss_ref(warped_moving, fixed, are_selected)
    l1 = 0.5 * _ncc_loss_ref(warped_fixed, moving, are_selected)
    g0 = (0.5 * weight) * _grad_loss_ref(fwd_dvf, penalty, int_downsize)
    g1 = (0.5 * weight) * _grad_loss_ref(bwd_dvf, penalty, int_downsize)
    return l0 + l1 + g0 + g1, l0 + l1, g0 + g1


if __name__ == "__main__":
    B, C, H, W = 2, 4, 16, 16
    key = jax.random.PRNGKey(0)
    ks = jax.random.split(key, 6)
    warped_moving = jax.random.normal(ks[0], (B, C, H, W), jnp.float32)
    fixed = jax.random.normal(ks[1], (B, C, H, W), jnp.float32)
    warped_fixed = jax.random.normal(ks[2], (B, C, H, W), jnp.float32)
    moving = jax.random.normal(ks[3], (B, C, H, W), jnp.float32)
    fwd_dvf = jax.random.normal(ks[4], (B, 2, H, W), jnp.float32)
    bwd_dvf = jax.random.normal(ks[5], (B, 2, H, W), jnp.float32)
    # deterministic selection mask (at least one slice selected per batch row)
    are_selected = jnp.array([[True, False, True, True],
                              [True, True, False, True]])

    fwd = jax.jit(functools.partial(ncc_with_grad_forward,
                                    int_downsize=2, weight=0.01, penalty='l2'))
    total, img_part, reg_part = fwd(warped_moving, fixed, warped_fixed, moving,
                                    are_selected, fwd_dvf, bwd_dvf)
    jax.block_until_ready(total)

    # Mirror the PyTorch return structure: (sum(losses), [image items, reg items])
    result = (total, [float(img_part), float(reg_part)])

    ref_total, ref_img, ref_reg = _forward_ref(
        warped_moving, fixed, warped_fixed, moving, are_selected,
        fwd_dvf, bwd_dvf, int_downsize=2, weight=0.01, penalty='l2')

    assert jnp.allclose(total, ref_total, rtol=5e-4, atol=1e-5), (total, ref_total)
    assert jnp.allclose(img_part, ref_img, rtol=5e-4, atol=1e-5), (img_part, ref_img)
    assert jnp.allclose(reg_part, ref_reg, rtol=5e-4, atol=1e-5), (reg_part, ref_reg)
    assert isinstance(result[1], list)

    print("KERNEL_OK")
</pallas_src>

<mosaic_0001>
module attributes {stable_mosaic.version = 11 : i64} {
  func.func @_ncc_kernel(%arg0: i32, %arg1: memref<24x136xf32, #tpu.memory_space<vmem>>, %arg2: memref<24x136xf32, #tpu.memory_space<vmem>>, %arg3: memref<1x128xf32, #tpu.memory_space<vmem>>, %arg4: memref<1x1x128xf32, #tpu.memory_space<vmem>>) attributes {dimension_semantics = [#tpu.dimension_semantics<parallel>], iteration_bounds = array<i64: 2>, scalar_prefetch = 0 : i64, scratch_operands = 0 : i64, tpu.core_type = #tpu.core_type<tc>, window_params = [{transform_indices = @transform_0, window_bounds = array<i64: 24, 136>}, {transform_indices = @transform_1, window_bounds = array<i64: 24, 136>}, {pipeline_mode = #tpu.pipeline_mode<synchronous>, transform_indices = @transform_2, window_bounds = array<i64: 1, 128>}, {transform_indices = @transform_3, window_bounds = array<i64: 1, 1, 128>}]} {
    %c0 = arith.constant 0 : index
    %c0_0 = arith.constant 0 : index
    %0 = vector.load %arg1[%c0, %c0_0] : memref<24x136xf32, #tpu.memory_space<vmem>>, vector<24x136xf32>
    %c0_1 = arith.constant 0 : index
    %c0_2 = arith.constant 0 : index
    %1 = vector.load %arg2[%c0_1, %c0_2] : memref<24x136xf32, #tpu.memory_space<vmem>>, vector<24x136xf32>
    %2 = vector.extract_strided_slice %0 {offsets = [0, 0], sizes = [24, 134], strides = [1, 1]} : vector<24x136xf32> to vector<24x134xf32>
    %3 = vector.extract_strided_slice %0 {offsets = [0, 1], sizes = [24, 134], strides = [1, 1]} : vector<24x136xf32> to vector<24x134xf32>
    %4 = arith.addf %2, %3 : vector<24x134xf32>
    %5 = vector.extract_strided_slice %0 {offsets = [0, 2], sizes = [24, 134], strides = [1, 1]} : vector<24x136xf32> to vector<24x134xf32>
    %6 = arith.addf %4, %5 : vector<24x134xf32>
    %7 = vector.extract_strided_slice %6 {offsets = [0, 0], sizes = [24, 128], strides = [1, 1]} : vector<24x134xf32> to vector<24x128xf32>
    %8 = vector.extract_strided_slice %6 {offsets = [0, 3], sizes = [24, 128], strides = [1, 1]} : vector<24x134xf32> to vector<24x128xf32>
    %9 = arith.addf %7, %8 : vector<24x128xf32>
    %10 = vector.extract_strided_slice %6 {offsets = [0, 6], sizes = [24, 128], strides = [1, 1]} : vector<24x134xf32> to vector<24x128xf32>
    %11 = arith.addf %9, %10 : vector<24x128xf32>
    %12 = vector.extract_strided_slice %11 {offsets = [0, 0], sizes = [22, 128], strides = [1, 1]} : vector<24x128xf32> to vector<22x128xf32>
    %13 = vector.extract_strided_slice %11 {offsets = [1, 0], sizes = [22, 128], strides = [1, 1]} : vector<24x128xf32> to vector<22x128xf32>
    %14 = arith.addf %12, %13 : vector<22x128xf32>
    %15 = vector.extract_strided_slice %11 {offsets = [2, 0], sizes = [22, 128], strides = [1, 1]} : vector<24x128xf32> to vector<22x128xf32>
    %16 = arith.addf %14, %15 : vector<22x128xf32>
    %17 = vector.extract_strided_slice %16 {offsets = [0, 0], sizes = [16, 128], strides = [1, 1]} : vector<22x128xf32> to vector<16x128xf32>
    %18 = vector.extract_strided_slice %16 {offsets = [3, 0], sizes = [16, 128], strides = [1, 1]} : vector<22x128xf32> to vector<16x128xf32>
    %19 = arith.addf %17, %18 : vector<16x128xf32>
    %20 = vector.extract_strided_slice %16 {offsets = [6, 0], sizes = [16, 128], strides = [1, 1]} : vector<22x128xf32> to vector<16x128xf32>
    %21 = arith.addf %19, %20 : vector<16x128xf32>
    %22 = vector.extract_strided_slice %1 {offsets = [0, 0], sizes = [24, 134], strides = [1, 1]} : vector<24x136xf32> to vector<24x134xf32>
    %23 = vector.extract_strided_slice %1 {offsets = [0, 1], sizes = [24, 134], strides = [1, 1]} : vector<24x136xf32> to vector<24x134xf32>
    %24 = arith.addf %22, %23 : vector<24x134xf32>
    %25 = vector.extract_strided_slice %1 {offsets = [0, 2], sizes = [24, 134], strides = [1, 1]} : vector<24x136xf32> to vector<24x134xf32>
    %26 = arith.addf %24, %25 : vector<24x134xf32>
    %27 = vector.extract_strided_slice %26 {offsets = [0, 0], sizes = [24, 128], strides = [1, 1]} : vector<24x134xf32> to vector<24x128xf32>
    %28 = vector.extract_strided_slice %26 {offsets = [0, 3], sizes = [24, 128], strides = [1, 1]} : vector<24x134xf32> to vector<24x128xf32>
    %29 = arith.addf %27, %28 : vector<24x128xf32>
    %30 = vector.extract_strided_slice %26 {offsets = [0, 6], sizes = [24, 128], strides = [1, 1]} : vector<24x134xf32> to vector<24x128xf32>
    %31 = arith.addf %29, %30 : vector<24x128xf32>
    %32 = vector.extract_strided_slice %31 {offsets = [0, 0], sizes = [22, 128], strides = [1, 1]} : vector<24x128xf32> to vector<22x128xf32>
    %33 = vector.extract_strided_slice %31 {offsets = [1, 0], sizes = [22, 128], strides = [1, 1]} : vector<24x128xf32> to vector<22x128xf32>
    %34 = arith.addf %32, %33 : vector<22x128xf32>
    %35 = vector.extract_strided_slice %31 {offsets = [2, 0], sizes = [22, 128], strides = [1, 1]} : vector<24x128xf32> to vector<22x128xf32>
    %36 = arith.addf %34, %35 : vector<22x128xf32>
    %37 = vector.extract_strided_slice %36 {offsets = [0, 0], sizes = [16, 128], strides = [1, 1]} : vector<22x128xf32> to vector<16x128xf32>
    %38 = vector.extract_strided_slice %36 {offsets = [3, 0], sizes = [16, 128], strides = [1, 1]} : vector<22x128xf32> to vector<16x128xf32>
    %39 = arith.addf %37, %38 : vector<16x128xf32>
    %40 = vector.extract_strided_slice %36 {offsets = [6, 0], sizes = [16, 128], strides = [1, 1]} : vector<22x128xf32> to vector<16x128xf32>
    %41 = arith.addf %39, %40 : vector<16x128xf32>
    %42 = arith.mulf %0, %0 : vector<24x136xf32>
    %43 = vector.extract_strided_slice %42 {offsets = [0, 0], sizes = [24, 134], strides = [1, 1]} : vector<24x136xf32> to vector<24x134xf32>
    %44 = vector.extract_strided_slice %42 {offsets = [0, 1], sizes = [24, 134], strides = [1, 1]} : vector<24x136xf32> to vector<24x134xf32>
    %45 = arith.addf %43, %44 : vector<24x134xf32>
    %46 = vector.extract_strided_slice %42 {offsets = [0, 2], sizes = [24, 134], strides = [1, 1]} : vector<24x136xf32> to vector<24x134xf32>
    %47 = arith.addf %45, %46 : vector<24x134xf32>
    %48 = vector.extract_strided_slice %47 {offsets = [0, 0], sizes = [24, 128], strides = [1, 1]} : vector<24x134xf32> to vector<24x128xf32>
    %49 = vector.extract_strided_slice %47 {offsets = [0, 3], sizes = [24, 128], strides = [1, 1]} : vector<24x134xf32> to vector<24x128xf32>
    %50 = arith.addf %48, %49 : vector<24x128xf32>
    %51 = vector.extract_strided_slice %47 {offsets = [0, 6], sizes = [24, 128], strides = [1, 1]} : vector<24x134xf32> to vector<24x128xf32>
    %52 = arith.addf %50, %51 : vector<24x128xf32>
    %53 = vector.extract_strided_slice %52 {offsets = [0, 0], sizes = [22, 128], strides = [1, 1]} : vector<24x128xf32> to vector<22x128xf32>
    %54 = vector.extract_strided_slice %52 {offsets = [1, 0], sizes = [22, 128], strides = [1, 1]} : vector<24x128xf32> to vector<22x128xf32>
    %55 = arith.addf %53, %54 : vector<22x128xf32>
    %56 = vector.extract_strided_slice %52 {offsets = [2, 0], sizes = [22, 128], strides = [1, 1]} : vector<24x128xf32> to vector<22x128xf32>
    %57 = arith.addf %55, %56 : vector<22x128xf32>
    %58 = vector.extract_strided_slice %57 {offsets = [0, 0], sizes = [16, 128], strides = [1, 1]} : vector<22x128xf32> to vector<16x128xf32>
    %59 = vector.extract_strided_slice %57 {offsets = [3, 0], sizes = [16, 128], strides = [1, 1]} : vector<22x128xf32> to vector<16x128xf32>
    %60 = arith.addf %58, %59 : vector<16x128xf32>
    %61 = vector.extract_strided_slice %57 {offsets = [6, 0], sizes = [16, 128], strides = [1, 1]} : vector<22x128xf32> to vector<16x128xf32>
    %62 = arith.addf %60, %61 : vector<16x128xf32>
    %63 = arith.mulf %1, %1 : vector<24x136xf32>
    %64 = vector.extract_strided_slice %63 {offsets = [0, 0], sizes = [24, 134], strides = [1, 1]} : vector<24x136xf32> to vector<24x134xf32>
    %65 = vector.extract_strided_slice %63 {offsets = [0, 1], sizes = [24, 134], strides = [1, 1]} : vector<24x136xf32> to vector<24x134xf32>
    %66 = arith.addf %64, %65 : vector<24x134xf32>
    %67 = vector.extract_strided_slice %63 {offsets = [0, 2], sizes = [24, 134], strides = [1, 1]} : vector<24x136xf32> to vector<24x134xf32>
    %68 = arith.addf %66, %67 : vector<24x134xf32>
    %69 = vector.extract_strided_slice %68 {offsets = [0, 0], sizes = [24, 128], strides = [1, 1]} : vector<24x134xf32> to vector<24x128xf32>
    %70 = vector.extract_strided_slice %68 {offsets = [0, 3], sizes = [24, 128], strides = [1, 1]} : vector<24x134xf32> to vector<24x128xf32>
    %71 = arith.addf %69, %70 : vector<24x128xf32>
    %72 = vector.extract_strided_slice %68 {offsets = [0, 6], sizes = [24, 128], strides = [1, 1]} : vector<24x134xf32> to vector<24x128xf32>
    %73 = arith.addf %71, %72 : vector<24x128xf32>
    %74 = vector.extract_strided_slice %73 {offsets = [0, 0], sizes = [22, 128], strides = [1, 1]} : vector<24x128xf32> to vector<22x128xf32>
    %75 = vector.extract_strided_slice %73 {offsets = [1, 0], sizes = [22, 128], strides = [1, 1]} : vector<24x128xf32> to vector<22x128xf32>
    %76 = arith.addf %74, %75 : vector<22x128xf32>
    %77 = vector.extract_strided_slice %73 {offsets = [2, 0], sizes = [22, 128], strides = [1, 1]} : vector<24x128xf32> to vector<22x128xf32>
    %78 = arith.addf %76, %77 : vector<22x128xf32>
    %79 = vector.extract_strided_slice %78 {offsets = [0, 0], sizes = [16, 128], strides = [1, 1]} : vector<22x128xf32> to vector<16x128xf32>
    %80 = vector.extract_strided_slice %78 {offsets = [3, 0], sizes = [16, 128], strides = [1, 1]} : vector<22x128xf32> to vector<16x128xf32>
    %81 = arith.addf %79, %80 : vector<16x128xf32>
    %82 = vector.extract_strided_slice %78 {offsets = [6, 0], sizes = [16, 128], strides = [1, 1]} : vector<22x128xf32> to vector<16x128xf32>
    %83 = arith.addf %81, %82 : vector<16x128xf32>
    %84 = arith.mulf %0, %1 : vector<24x136xf32>
    %85 = vector.extract_strided_slice %84 {offsets = [0, 0], sizes = [24, 134], strides = [1, 1]} : vector<24x136xf32> to vector<24x134xf32>
    %86 = vector.extract_strided_slice %84 {offsets = [0, 1], sizes = [24, 134], strides = [1, 1]} : vector<24x136xf32> to vector<24x134xf32>
    %87 = arith.addf %85, %86 : vector<24x134xf32>
    %88 = vector.extract_strided_slice %84 {offsets = [0, 2], sizes = [24, 134], strides = [1, 1]} : vector<24x136xf32> to vector<24x134xf32>
    %89 = arith.addf %87, %88 : vector<24x134xf32>
    %90 = vector.extract_strided_slice %89 {offsets = [0, 0], sizes = [24, 128], strides = [1, 1]} : vector<24x134xf32> to vector<24x128xf32>
    %91 = vector.extract_strided_slice %89 {offsets = [0, 3], sizes = [24, 128], strides = [1, 1]} : vector<24x134xf32> to vector<24x128xf32>
    %92 = arith.addf %90, %91 : vector<24x128xf32>
    %93 = vector.extract_strided_slice %89 {offsets = [0, 6], sizes = [24, 128], strides = [1, 1]} : vector<24x134xf32> to vector<24x128xf32>
    %94 = arith.addf %92, %93 : vector<24x128xf32>
    %95 = vector.extract_strided_slice %94 {offsets = [0, 0], sizes = [22, 128], strides = [1, 1]} : vector<24x128xf32> to vector<22x128xf32>
    %96 = vector.extract_strided_slice %94 {offsets = [1, 0], sizes = [22, 128], strides = [1, 1]} : vector<24x128xf32> to vector<22x128xf32>
    %97 = arith.addf %95, %96 : vector<22x128xf32>
    %98 = vector.extract_strided_slice %94 {offsets = [2, 0], sizes = [22, 128], strides = [1, 1]} : vector<24x128xf32> to vector<22x128xf32>
    %99 = arith.addf %97, %98 : vector<22x128xf32>
    %100 = vector.extract_strided_slice %99 {offsets = [0, 0], sizes = [16, 128], strides = [1, 1]} : vector<22x128xf32> to vector<16x128xf32>
    %101 = vector.extract_strided_slice %99 {offsets = [3, 0], sizes = [16, 128], strides = [1, 1]} : vector<22x128xf32> to vector<16x128xf32>
    %102 = arith.addf %100, %101 : vector<16x128xf32>
    %103 = vector.extract_strided_slice %99 {offsets = [6, 0], sizes = [16, 128], strides = [1, 1]} : vector<22x128xf32> to vector<16x128xf32>
    %104 = arith.addf %102, %103 : vector<16x128xf32>
    %cst = arith.constant 0.0123456791 : f32
    %105 = vector.broadcast %cst : f32 to vector<16x128xf32>
    %106 = arith.mulf %21, %105 : vector<16x128xf32>
    %cst_3 = arith.constant 0.0123456791 : f32
    %107 = vector.broadcast %cst_3 : f32 to vector<16x128xf32>
    %108 = arith.mulf %41, %107 : vector<16x128xf32>
    %109 = arith.mulf %108, %21 : vector<16x128xf32>
    %110 = arith.subf %104, %109 : vector<16x128xf32>
    %111 = arith.mulf %106, %41 : vector<16x128xf32>
    %112 = arith.subf %110, %111 : vector<16x128xf32>
    %113 = arith.mulf %106, %108 : vector<16x128xf32>
    %cst_4 = arith.constant 8.100000e+01 : f32
    %114 = vector.broadcast %cst_4 : f32 to vector<16x128xf32>
    %115 = arith.mulf %113, %114 : vector<16x128xf32>
    %116 = arith.addf %112, %115 : vector<16x128xf32>
    %cst_5 = arith.constant 2.000000e+00 : f32
    %117 = vector.broadcast %cst_5 : f32 to vector<16x128xf32>
    %118 = arith.mulf %117, %106 : vector<16x128xf32>
    %119 = arith.mulf %118, %21 : vector<16x128xf32>
    %120 = arith.subf %62, %119 : vector<16x128xf32>
    %121 = arith.mulf %106, %106 : vector<16x128xf32>
    %cst_6 = arith.constant 8.100000e+01 : f32
    %122 = vector.broadcast %cst_6 : f32 to vector<16x128xf32>
    %123 = arith.mulf %121, %122 : vector<16x128xf32>
    %124 = arith.addf %120, %123 : vector<16x128xf32>
    %cst_7 = arith.constant 2.000000e+00 : f32
    %125 = vector.broadcast %cst_7 : f32 to vector<16x128xf32>
    %126 = arith.mulf %125, %108 : vector<16x128xf32>
    %127 = arith.mulf %126, %41 : vector<16x128xf32>
    %128 = arith.subf %83, %127 : vector<16x128xf32>
    %129 = arith.mulf %108, %108 : vector<16x128xf32>
    %cst_8 = arith.constant 8.100000e+01 : f32
    %130 = vector.broadcast %cst_8 : f32 to vector<16x128xf32>
    %131 = arith.mulf %129, %130 : vector<16x128xf32>
    %132 = arith.addf %128, %131 : vector<16x128xf32>
    %133 = arith.mulf %116, %116 : vector<16x128xf32>
    %134 = arith.mulf %124, %132 : vector<16x128xf32>
    %cst_9 = arith.constant 9.99999974E-6 : f32
    %135 = vector.broadcast %cst_9 : f32 to vector<16x128xf32>
    %136 = arith.addf %134, %135 : vector<16x128xf32>
    %137 = arith.divf %133, %136 : vector<16x128xf32>
    %c0_10 = arith.constant 0 : index
    %c0_11 = arith.constant 0 : index
    %138 = vector.load %arg3[%c0_10, %c0_11] : memref<1x128xf32, #tpu.memory_space<vmem>>, vector<1x128xf32>
    %139 = vector.broadcast %138 : vector<1x128xf32> to vector<16x128xf32>
    %140 = arith.mulf %137, %139 : vector<16x128xf32>
    %cst_12 = arith.constant dense<0.000000e+00> : vector<128xf32>
    %141 = vector.multi_reduction <add>, %140, %cst_12 [0] : vector<16x128xf32> to vector<128xf32>
    %142 = vector.shape_cast %141 : vector<128xf32> to vector<1x128xf32>
    %143 = vector.shape_cast %142 : vector<1x128xf32> to vector<1x1x128xf32>
    %c0_13 = arith.constant 0 : index
    %c0_14 = arith.constant 0 : index
    %c0_15 = arith.constant 0 : index
    %144 = vector.load %arg4[%c0_13, %c0_14, %c0_15] : memref<1x1x128xf32, #tpu.memory_space<vmem>>, vector<1x1x128xf32>
    tpu.vector_store %arg4[%c0_13, %c0_14, %c0_15], %143 {strides = array<i32>} : memref<1x1x128xf32, #tpu.memory_space<vmem>>, vector<1x1x128xf32>,
    return
  }
  func.func @transform_0(%arg0: i32) -> (i32, i32) {
    %c0_i32 = arith.constant 0 : i32
    %c0_i32_0 = arith.constant 0 : i32
    return %arg0, %c0_i32 : i32, i32
  }
  func.func @transform_1(%arg0: i32) -> (i32, i32) {
    %c0_i32 = arith.constant 0 : i32
    %c0_i32_0 = arith.constant 0 : i32
    return %arg0, %c0_i32 : i32, i32
  }
  func.func @transform_2(%arg0: i32) -> (i32, i32) {
    %c0_i32 = arith.constant 0 : i32
    %c0_i32_0 = arith.constant 0 : i32
    %c0_i32_1 = arith.constant 0 : i32
    return %c0_i32, %c0_i32_0 : i32, i32
  }
  func.func @transform_3(%arg0: i32) -> (i32, i32, i32) {
    %c0_i32 = arith.constant 0 : i32
    %c0_i32_0 = arith.constant 0 : i32
    %c0_i32_1 = arith.constant 0 : i32
    return %arg0, %c0_i32, %c0_i32_0 : i32, i32, i32
  }
}

module attributes {stable_mosaic.version = 11 : i64} {
  func.func @_grad_kernel(%arg0: i32, %arg1: memref<1x16x16xf32, #tpu.memory_space<vmem>>, %arg2: memref<1x1x1xf32, #tpu.memory_space<vmem>>, %arg3: memref<1x1x1xf32, #tpu.memory_space<vmem>>) attributes {dimension_semantics = [#tpu.dimension_semantics<parallel>], iteration_bounds = array<i64: 4>, scalar_prefetch = 0 : i64, scratch_operands = 0 : i64, tpu.core_type = #tpu.core_type<tc>, window_params = [{transform_indices = @transform_0, window_bounds = array<i64: 1, 16, 16>}, {transform_indices = @transform_1, window_bounds = array<i64: 1, 1, 1>}, {transform_indices = @transform_2, window_bounds = array<i64: 1, 1, 1>}]} {
    %c0 = arith.constant 0 : index
    %c0_0 = arith.constant 0 : index
    %c0_1 = arith.constant 0 : index
    %0 = vector.load %arg1[%c0, %c0_0, %c0_1] : memref<1x16x16xf32, #tpu.memory_space<vmem>>, vector<1x16x16xf32>
    %1 = vector.shape_cast %0 : vector<1x16x16xf32> to vector<16x16xf32>
    %2 = vector.extract_strided_slice %1 {offsets = [1, 0], sizes = [15, 16], strides = [1, 1]} : vector<16x16xf32> to vector<15x16xf32>
    %3 = vector.extract_strided_slice %1 {offsets = [0, 0], sizes = [15, 16], strides = [1, 1]} : vector<16x16xf32> to vector<15x16xf32>
    %4 = arith.subf %2, %3 : vector<15x16xf32>
    %5 = vector.extract_strided_slice %1 {offsets = [0, 1], sizes = [16, 15], strides = [1, 1]} : vector<16x16xf32> to vector<16x15xf32>
    %6 = vector.extract_strided_slice %1 {offsets = [0, 0], sizes = [16, 15], strides = [1, 1]} : vector<16x16xf32> to vector<16x15xf32>
    %7 = arith.subf %5, %6 : vector<16x15xf32>
    %8 = arith.mulf %4, %4 : vector<15x16xf32>
    %9 = arith.mulf %7, %7 : vector<16x15xf32>
    %10 = vector.shape_cast %9 : vector<16x15xf32> to vector<1x16x15xf32>
    %cst = arith.constant dense<0.000000e+00> : vector<1xf32>
    %11 = vector.multi_reduction <add>, %10, %cst [1, 2] : vector<1x16x15xf32> to vector<1xf32>
    %12 = vector.shape_cast %11 : vector<1xf32> to vector<1x1x1xf32>
    %13 = vector.extract %12[0, 0, 0] : f32 from vector<1x1x1xf32>
    %14 = vector.broadcast %13 : f32 to vector<1x1x1xf32>
    %c0_2 = arith.constant 0 : index
    %c0_3 = arith.constant 0 : index
    %c0_4 = arith.constant 0 : index
    %15 = vector.load %arg2[%c0_2, %c0_3, %c0_4] : memref<1x1x1xf32, #tpu.memory_space<vmem>>, vector<1x1x1xf32>
    tpu.vector_store %arg2[%c0_2, %c0_3, %c0_4], %14 {strides = array<i32>} : memref<1x1x1xf32, #tpu.memory_space<vmem>>, vector<1x1x1xf32>,
    %16 = vector.shape_cast %8 : vector<15x16xf32> to vector<1x15x16xf32>
    %cst_5 = arith.constant dense<0.000000e+00> : vector<1xf32>
    %17 = vector.multi_reduction <add>, %16, %cst_5 [1, 2] : vector<1x15x16xf32> to vector<1xf32>
    %18 = vector.shape_cast %17 : vector<1xf32> to vector<1x1x1xf32>
    %19 = vector.extract %18[0, 0, 0] : f32 from vector<1x1x1xf32>
    %20 = vector.broadcast %19 : f32 to vector<1x1x1xf32>
    %c0_6 = arith.constant 0 : index
    %c0_7 = arith.constant 0 : index
    %c0_8 = arith.constant 0 : index
    %21 = vector.load %arg3[%c0_6, %c0_7, %c0_8] : memref<1x1x1xf32, #tpu.memory_space<vmem>>, vector<1x1x1xf32>
    tpu.vector_store %arg3[%c0_6, %c0_7, %c0_8], %20 {strides = array<i32>} : memref<1x1x1xf32, #tpu.memory_space<vmem>>, vector<1x1x1xf32>,
    return
  }
  func.func @transform_0(%arg0: i32) -> (i32, i32, i32) {
    %c0_i32 = arith.constant 0 : i32
    %c0_i32_0 = arith.constant 0 : i32
    %c0_i32_1 = arith.constant 0 : i32
    return %arg0, %c0_i32, %c0_i32_0 : i32, i32, i32
  }
  func.func @transform_1(%arg0: i32) -> (i32, i32, i32) {
    %c0_i32 = arith.constant 0 : i32
    %c0_i32_0 = arith.constant 0 : i32
    %c0_i32_1 = arith.constant 0 : i32
    return %arg0, %c0_i32, %c0_i32_0 : i32, i32, i32
  }
  func.func @transform_2(%arg0: i32) -> (i32, i32, i32) {
    %c0_i32 = arith.constant 0 : i32
    %c0_i32_0 = arith.constant 0 : i32
    %c0_i32_1 = arith.constant 0 : i32
    return %arg0, %c0_i32, %c0_i32_0 : i32, i32, i32
  }
}

</mosaic_0001>

<bundles_post_ra>
// kernel: squeeze.2
= control target key start
LH: loop header
LB: loop body
LE: loop exit
PB: predicated region body
PF: predicated region fallthrough
CT: control target
= control target key end

     0   :  { %s43_s8 = smov 32   ;;  %vm7_vm0 = vcmask 261120   ;;  %s44_s9 = smov 64   ;;  %s64_s0 = inlined_call_operand.vmem [shape: f32[2,128], index: 0, kind: input, shape index: {}]   ;;  %s65_s1 = inlined_call_operand.vmem [shape: f32[2,4,32], index: 1, kind: output, shape index: {}]  }
   0x1   :  { %v4_v0 = vld [vmem:[%s64_s0] sm:$0x3]  ;;  %s42_s0 = smov 96  }
   0x2   :  { %5 = vst [vmem:[#allocation1] sm:$0x3] %v4_v0 }
   0x9   :  { %v9_v1 = vld [vmem:[#allocation1] sm:$0x3]  }
   0xa   :  { %v21_v2 = vld [vmem:[#allocation1] sm:$0x3]   ;;  %10 = vrot.lane.b32.xlu0 %v9_v1, %s42_s0 }
   0xb   :  { %22 = vrot.lane.b32.xlu1 %v21_v2, %s43_s8  ;;  %v6_v3 = vld [vmem:[#allocation1] sm:$0x3]  }
   0xc   :  { %v15_v4 = vld [vmem:[#allocation1] sm:$0x3]   ;;  %8 = vst.msk [vmem:[#allocation0] ss:$8 sm:$0x3] %vm7_vm0, %v6_v3  }
   0xe   :  { %16 = vrot.lane.b32.xlu0 %v15_v4, %s44_s9 }
  0x7c   :  { %v11_v5 = vpop.permute.xlu0 %10  }
  0x7d   :  { %v23_v6 = vpop.permute.xlu1 %22   ;;  %14 = vst.msk [vmem:[#allocation0 + $0x1] ss:$8 sm:$0x3] %vm7_vm0, %v11_v5  }
  0x7e   :  { %26 = vst.msk [vmem:[#allocation0 + $0x3] ss:$8 sm:$0x3] %vm7_vm0, %v23_v6  }
  0x80   :  { %v17_v7 = vpop.permute.xlu0 %16  }
  0x81   :  { %20 = vst.msk [vmem:[#allocation0 + $0x2] ss:$8 sm:$0x3] %vm7_vm0, %v17_v7  }
  0x88   :  { %v30_v8 = vld [vmem:[#allocation0] sm:$0xf]  ;;  %v34_v9 = vld [vmem:[#allocation0 + $0x8] sm:$0xf] }
  0x89   :  { %32 = vst [vmem:[%s65_s1] sm:$0xf] %v30_v8  ;;  %38 = vst [vmem:[%s65_s1 + $0x4] sm:$0xf] %v34_v9 }

// kernel: ncc_with_grad_forward.6
= control target key start
LH: loop header
LB: loop body
LE: loop exit
PB: predicated region body
PF: predicated region fallthrough
CT: control target
= control target key end

     0   :  { %s342_s9 = smov 0   ;;  %s367_s0 = inlined_call_operand.vmem [shape: f32[4,16,16], index: 0, kind: input, shape index: {}]   ;;  %s368_s1 = inlined_call_operand.vmem [shape: f32[4,1,1], index: 1, kind: output, shape index: {0}]   ;;  %s369_s2 = inlined_call_operand.vmem [shape: f32[4,1,1], index: 2, kind: output, shape index: {1}]  }
   0x1 LB: > { %s293_s10 = sadd.s32 4294967295, %s323_s9   ;;  %p297_p0 = scmp.ge.s32.totalorder %s323_s9, 1  ;;  %s323_s9 = sphi %s342_s9, %s13_s9  }
   0x2   : > { %p115_p1 = scmp.lt.s32.totalorder %s323_s9, 5 }
   0x4   : > { %p116_p2 = pnand %p297_p0, %p115_p1 }
   0x5   : > { %p138_p3 = scmp.lt.s32.totalorder (!%p116_p2), %s293_s10, 3  ;;  %s325_s15 = smov (!%p116_p2), 1   ;;  %vm153_vm0 = vcmask (!%p116_p2), 1040384   ;;  %vm199_vm1 = vcmask (!%p116_p2), 1046528   ;;  %vm205_vm2 = vcmask (!%p116_p2), 130048   ;;  %vm207_vm3 = vcmask (!%p116_p2), 129024  }
   0x6   : > { %119 = sbr.rel (%p116_p2) target bundleno = 465 (0x1d1), region = 24  ;;  %s326_s16 = smov (!%p116_p2), 127   ;;  %vm181_vm4 = vcmask (!%p116_p2), 121856   ;;  %vm195_vm5 = vcmask (!%p116_p2), 0  }
   0xd   : > { %s371_s10 = smov (!%p138_p3, %s293_s10), 3 }
   0xe   : > { %s302_s11 = sshll.u32 %s371_s10, 4  ;;  %s145_s19 = scalar_lea.vmem %s368_s1, %s371_s10 }
   0xf   : > { %s142_s14 = scalar_lea.vmem %s367_s0, %s302_s11  ;;  %s148_s23 = scalar_lea.vmem %s369_s2, %s371_s10 }
  0x10   : > { %v149_v0 = vld [vmem:[%s142_s14] sm:$0xff]  ;;  %v150_v1 = vld [vmem:[%s142_s14 + $0x8] sm:$0xff] }
  0x11   : > { %161 = vrot.lane.b32.xlu0 %v149_v0, %s325_s15  ;;  %v154_v8 = vrot.slane %v149_v0, 7  ;;  %v155_v9 = vrot.slane %v150_v1, 7 }
  0x13   : > { %v156_v10 = vsel %vm153_vm0, %v154_v8, %v155_v9  ;;  %v159_v11 = vsub.f32 %v149_v0, %v154_v8 }
  0x14   : > { %v160_v12 = vsub.f32 %v150_v1, %v156_v10 }
  0x15   : > { %163 = vrot.lane.b32.xlu0 %v150_v1, %s325_s15  ;;  %v169_v13 = vmul.f32 %v159_v11, %v159_v11 }
  0x16   : > { %v170_v14 = vmul.f32 %v160_v12, %v160_v12 }
  0x17   : > { %v200_v15 = vrot.slane %v169_v13, 1 }
  0x18   : > { %v201_v16 = vrot.slane %v170_v14, 1 }
  0x1a   : > { %v202_v17 = vsel %vm199_vm1, %v200_v15, %v201_v16  ;;  %v208_v19 = vsel %vm207_vm3, %v201_v16, 0.0 }
  0x1b   : > { %v206_v18 = vsel %vm205_vm2, %v202_v17, 0.0 }
  0x1c   : > { %v209_v20 = vadd.f32 %v208_v19, %v206_v18 }
  0x83   : > { %v162_v2 = vpop.permute.xlu0 %161 }
  0x84   : > { %v167_v3 = vsub.f32 %v149_v0, %v162_v2 }
  0x86   : > { %v171_v4 = vmul.f32 %v167_v3, %v167_v3 }
  0x87   : > { %v164_v5 = vpop.permute.xlu0 %163 }
  0x88   : > { %v168_v6 = vsub.f32 %v150_v1, %v164_v5  ;;  %175 = vrot.lane.b32.xlu1 %v171_v4, %s326_s16 }
  0x8a   : > { %v172_v7 = vmul.f32 %v168_v6, %v168_v6 }
  0x8c   : > { %177 = vrot.lane.b32.xlu1 %v172_v7, %s326_s16 }
  0xb0   : > { %210 = vadd.xlane.f32.xlu1 %v209_v20 }
  0xfa   : > { %v176_v21 = vpop.permute.xlu1 %175 }
  0xfb   : > { %v182_v23 = vsel %vm181_vm4, %v176_v21, 0.0 }
  0xfe   : > { %v178_v22 = vpop.permute.xlu1 %177 }
  0xff   : > { %v183_v24 = vsel %vm181_vm4, %v178_v22, 0.0 }
 0x100   : > { %v184_v25 = vadd.f32 %v183_v24, %v182_v23 }
 0x102   : > { %185 = vadd.xlane.f32.xlu0 %v184_v25 }
 0x13d   : > { %v211_v26 = vpop.xlane.xlu1 %210 }
 0x13e   : > { %v212_v27 = vrot.slane %v211_v26, 4 }
 0x140   : > { %v213_v28 = vadd.f32 %v212_v27, %v211_v26 }
 0x142   : > { %v214_v29 = vrot.slane %v213_v28, 2 }
 0x144   : > { %v215_v33 = vadd.f32 %v214_v29, %v213_v28 }
 0x146   : > { %v216_v36 = vrot.slane %v215_v33, 1 }
 0x148   : > { %v217_v39 = vadd.f32 %v216_v36, %v215_v33 }
 0x18f   : > { %v186_v30 = vpop.xlane.xlu0 %185 }
 0x190   : > { %v187_v31 = vrot.slane %v186_v30, 4 }
 0x192   : > { %v188_v32 = vadd.f32 %v187_v31, %v186_v30 }
 0x194   : > { %v189_v34 = vrot.slane %v188_v32, 2 }
 0x196   : > { %v190_v35 = vadd.f32 %v189_v34, %v188_v32 }
 0x198   : > { %v191_v37 = vrot.slane %v190_v35, 1 }
 0x19a   : > { %v192_v38 = vadd.f32 %v191_v37, %v190_v35 }
 0x19c   : > { %303 = vpush %v192_v38 }
 0x19d   : > { %305 = vpush %v217_v39 }
 0x1cd   : > { %s304_s20 = spop %303 }
 0x1ce   : > { %v194_v40 = vstv %s304_s20  ;;  %s306_s24 = spop %305 }
 0x1cf   : > { %196 = vst.msk [vmem:[%s145_s19] sm:$0x1] %vm195_vm5, %v194_v40  ;;  %v219_v41 = vstv %s306_s24 }
 0x1d0   : > { %220 = vst.msk [vmem:[%s148_s23] sm:$0x1] %vm195_vm5, %v219_v41 }
 0x1d1 PF: > { %s13_s9 = sadd.s32 1, %s323_s9  }
 0x1d2   : > { %p10_p4 = scmp.ge.s32.totalorder %s13_s9, 6  }
 0x1d4   :  { %12 = sbr.rel (!%p10_p4) target bundleno = 1 (0x1), region = 66 }

// kernel: ncc_with_grad_forward.4
= control target key start
LH: loop header
LB: loop body
LE: loop exit
PB: predicated region body
PF: predicated region fallthrough
CT: control target
= control target key end

     0   :  { %s1195_s12 = smov 0   ;;  %s1774_s0 = inlined_call_operand.vmem [shape: f32[48,136], index: 0, kind: input, shape index: {}]   ;;  %s1775_s1 = inlined_call_operand.vmem [shape: f32[48,136], index: 1, kind: input, shape index: {}]   ;;  %s1776_s2 = inlined_call_operand.vmem [shape: f32[1,128], index: 2, kind: input, shape index: {}]   ;;  %s1777_s3 = inlined_call_operand.vmem [shape: f32[2,1,128], index: 3, kind: output, shape index: {}]  }
   0x1 LB: > { %s1201_s13 = sadd.s32 4294967295, %s1169_s12   ;;  %p1137_p0 = scmp.ge.s32.totalorder %s1169_s12, 1  ;;  %s1169_s12 = sphi %s1195_s12, %s13_s12  }
   0x2   : > { %p151_p1 = scmp.lt.s32.totalorder %s1169_s12, 3 }
   0x4   : > { %p152_p2 = pnand %p1137_p0, %p151_p1 }
   0x5   : > { %s180_s14 = smul.u32 (!%p152_p2), 3, %s1201_s13  ;;  %s1171_s19 = smov (!%p152_p2), 127   ;;  %vm227_vm0 = vcmask (!%p152_p2), 1039360   ;;  %vm255_vm1 = vcmask (!%p152_p2), 1031168   ;;  %vm289_vm2 = vcmask (!%p152_p2), 1022976   ;;  %vm311_vm3 = vcmask (!%p152_p2), 998400  }
   0x6   : > { %155 = sbr.rel (%p152_p2) target bundleno = 469 (0x1d5), region = 32  ;;  %s1172_s20 = smov (!%p152_p2), 126   ;;  %vm324_vm4 = vcmask (!%p152_p2), 1046528   ;;  %vm336_vm5 = vcmask (!%p152_p2), 1045504   ;;  %vm351_vm6 = vcmask (!%p152_p2), 1044480   ;;  %vm361_vm7 = vcmask (!%p152_p2), 1041408  }
   0x7   : > { %p181_p3 = scmp.lt.s32.totalorder (!%p152_p2), %s180_s14, 5  ;;  %s1173_s24 = smov (!%p152_p2), 125  }
   0x8   : > { %s1174_s25 = smov (!%p152_p2), 122   ;;  %p194_p4 = scmp.lt.s32.totalorder (!%p152_p2), %s1201_s13, 1 }
   0xd   : > { %s1779_s14 = smov (!%p181_p3, %s180_s14), 5  ;;  %s1781_s13 = smov (!%p194_p4, %s1201_s13), 1 }
   0xe   : > { %s1145_s15 = sshll.u32 %s1779_s14, 4  ;;  %s196_s30 = scalar_lea.vmem %s1777_s3, %s1781_s13 }
   0xf   : > { %s185_s18 = scalar_lea.vmem %s1774_s0, %s1145_s15  ;;  %s192_s23 = scalar_lea.vmem %s1775_s1, %s1145_s15 }
  0x10   : > { %v1209_v0 = vld [vmem:[%s185_s18 + $0x10] sm:$0xff]  ;;  %v1211_v1 = vld [vmem:[%s185_s18] sm:$0xff]  ;;  %v1217_v2 = vld [vmem:[%s185_s18 + $0x18] sm:$0xff] }
  0x11   : > { %219 = vrot.lane.b32.xlu1 %v1209_v0, %s1171_s19  ;;  %215 = vrot.lane.b32.xlu0 %v1211_v1, %s1171_s19  ;;  %v1219_v3 = vld [vmem:[%s185_s18 + $0x8] sm:$0xff]  ;;  %v1227_v5 = vld [vmem:[%s185_s18 + $0x20] sm:$0xff]  ;;  %v1290_v13 = vmul.f32 %v1211_v1, %v1211_v1  ;;  %v1298_v14 = vmul.f32 %v1217_v2, %v1217_v2  ;;  %v1302_v15 = vmul.f32 %v1209_v0, %v1209_v0 }
  0x12   : > { %v1225_v4 = vld [vmem:[%s185_s18 + $0x28] sm:$0xff]  ;;  %v1250_v7 = vld [vmem:[%s192_s23] sm:$0xff]  ;;  %v1256_v8 = vld [vmem:[%s192_s23 + $0x18] sm:$0xff]  ;;  %v1286_v12 = vmul.f32 %v1219_v3, %v1219_v3  ;;  %v1314_v17 = vmul.f32 %v1227_v5, %v1227_v5 }
  0x13   : > { %v1248_v6 = vld [vmem:[%s192_s23 + $0x8] sm:$0xff]  ;;  %v1258_v9 = vld [vmem:[%s192_s23 + $0x10] sm:$0xff]  ;;  %v1266_v11 = vld [vmem:[%s192_s23 + $0x20] sm:$0xff]  ;;  %v1310_v16 = vmul.f32 %v1225_v4, %v1225_v4  ;;  %v1326_v19 = vmul.f32 %v1250_v7, %v1250_v7  ;;  %v1334_v20 = vmul.f32 %v1256_v8, %v1256_v8  ;;  %v1386_v25 = vmul.f32 %v1250_v7, %v1211_v1 }
  0x14   : > { %v1264_v10 = vld [vmem:[%s192_s23 + $0x28] sm:$0xff]  ;;  %v1322_v18 = vmul.f32 %v1248_v6, %v1248_v6  ;;  %v1338_v21 = vmul.f32 %v1258_v9, %v1258_v9  ;;  %v1350_v23 = vmul.f32 %v1266_v11, %v1266_v11  ;;  %v1382_v24 = vmul.f32 %v1248_v6, %v1219_v3 }
  0x15   : > { %221 = vrot.lane.b32.xlu1 %v1217_v2, %s1171_s19  ;;  %217 = vrot.lane.b32.xlu0 %v1219_v3, %s1171_s19  ;;  %v1346_v22 = vmul.f32 %v1264_v10, %v1264_v10  ;;  %v1394_v26 = vmul.f32 %v1256_v8, %v1217_v2  ;;  %v1398_v27 = vmul.f32 %v1258_v9, %v1209_v0 }
  0x16   : > { %v1406_v28 = vmul.f32 %v1264_v10, %v1225_v4  ;;  %v1410_v29 = vmul.f32 %v1266_v11, %v1227_v5 }
  0x19   : > { %225 = vrot.lane.b32.xlu1 %v1225_v4, %s1171_s19  ;;  %223 = vrot.lane.b32.xlu0 %v1227_v5, %s1171_s19 }
  0x1d   : > { %245 = vrot.lane.b32.xlu1 %v1219_v3, %s1172_s20  ;;  %243 = vrot.lane.b32.xlu0 %v1211_v1, %s1172_s20 }
  0x21   : > { %249 = vrot.lane.b32.xlu1 %v1217_v2, %s1172_s20  ;;  %247 = vrot.lane.b32.xlu0 %v1209_v0, %s1172_s20 }
  0x25   : > { %253 = vrot.lane.b32.xlu1 %v1225_v4, %s1172_s20  ;;  %251 = vrot.lane.b32.xlu0 %v1227_v5, %s1172_s20 }
  0x29   : > { %379 = vrot.lane.b32.xlu1 %v1248_v6, %s1171_s19  ;;  %377 = vrot.lane.b32.xlu0 %v1250_v7, %s1171_s19 }
  0x2d   : > { %383 = vrot.lane.b32.xlu1 %v1256_v8, %s1171_s19  ;;  %381 = vrot.lane.b32.xlu0 %v1258_v9, %s1171_s19 }
  0x31   : > { %387 = vrot.lane.b32.xlu1 %v1264_v10, %s1171_s19  ;;  %385 = vrot.lane.b32.xlu0 %v1266_v11, %s1171_s19 }
  0x35   : > { %406 = vrot.lane.b32.xlu1 %v1248_v6, %s1172_s20  ;;  %404 = vrot.lane.b32.xlu0 %v1250_v7, %s1172_s20 }
  0x39   : > { %410 = vrot.lane.b32.xlu1 %v1256_v8, %s1172_s20  ;;  %408 = vrot.lane.b32.xlu0 %v1258_v9, %s1172_s20 }
  0x3d   : > { %414 = vrot.lane.b32.xlu1 %v1264_v10, %s1172_s20  ;;  %412 = vrot.lane.b32.xlu0 %v1266_v11, %s1172_s20 }
  0x41   : > { %539 = vrot.lane.b32.xlu1 %v1286_v12, %s1171_s19  ;;  %537 = vrot.lane.b32.xlu0 %v1290_v13, %s1171_s19 }
  0x45   : > { %543 = vrot.lane.b32.xlu1 %v1298_v14, %s1171_s19  ;;  %541 = vrot.lane.b32.xlu0 %v1302_v15, %s1171_s19 }
  0x49   : > { %547 = vrot.lane.b32.xlu1 %v1310_v16, %s1171_s19  ;;  %545 = vrot.lane.b32.xlu0 %v1314_v17, %s1171_s19 }
  0x4d   : > { %699 = vrot.lane.b32.xlu1 %v1322_v18, %s1171_s19  ;;  %697 = vrot.lane.b32.xlu0 %v1326_v19, %s1171_s19 }
  0x51   : > { %703 = vrot.lane.b32.xlu1 %v1334_v20, %s1171_s19  ;;  %701 = vrot.lane.b32.xlu0 %v1338_v21, %s1171_s19 }
  0x55   : > { %707 = vrot.lane.b32.xlu1 %v1346_v22, %s1171_s19  ;;  %705 = vrot.lane.b32.xlu0 %v1350_v23, %s1171_s19 }
  0x59   : > { %566 = vrot.lane.b32.xlu1 %v1286_v12, %s1172_s20  ;;  %564 = vrot.lane.b32.xlu0 %v1290_v13, %s1172_s20 }
  0x5d   : > { %570 = vrot.lane.b32.xlu1 %v1298_v14, %s1172_s20  ;;  %568 = vrot.lane.b32.xlu0 %v1302_v15, %s1172_s20 }
  0x61   : > { %574 = vrot.lane.b32.xlu1 %v1310_v16, %s1172_s20  ;;  %572 = vrot.lane.b32.xlu0 %v1314_v17, %s1172_s20 }
  0x65   : > { %726 = vrot.lane.b32.xlu1 %v1322_v18, %s1172_s20  ;;  %724 = vrot.lane.b32.xlu0 %v1326_v19, %s1172_s20 }
  0x69   : > { %730 = vrot.lane.b32.xlu1 %v1334_v20, %s1172_s20  ;;  %728 = vrot.lane.b32.xlu0 %v1338_v21, %s1172_s20 }
  0x6d   : > { %734 = vrot.lane.b32.xlu1 %v1346_v22, %s1172_s20  ;;  %732 = vrot.lane.b32.xlu0 %v1350_v23, %s1172_s20 }
  0x71   : > { %859 = vrot.lane.b32.xlu1 %v1382_v24, %s1171_s19  ;;  %857 = vrot.lane.b32.xlu0 %v1386_v25, %s1171_s19 }
  0x75   : > { %863 = vrot.lane.b32.xlu1 %v1394_v26, %s1171_s19  ;;  %861 = vrot.lane.b32.xlu0 %v1398_v27, %s1171_s19 }
  0x79   : > { %867 = vrot.lane.b32.xlu1 %v1406_v28, %s1171_s19  ;;  %865 = vrot.lane.b32.xlu0 %v1410_v29, %s1171_s19 }
  0x83   : > { %v220_v30 = vpop.permute.xlu1 %219  ;;  %v216_v31 = vpop.permute.xlu0 %215 }
  0x87   : > { %v222_v32 = vpop.permute.xlu1 %221  ;;  %v218_v33 = vpop.permute.xlu0 %217 }
  0x88   : > { %v228_v36 = vsel %vm227_vm0, %v216_v31, %v218_v33  ;;  %v238_v37 = vadd.f32 %v218_v33, %v1219_v3  ;;  %v229_v41 = vsel %vm227_vm0, %v220_v30, %v222_v32  ;;  %v240_v45 = vadd.f32 %v222_v32, %v1217_v2 }
  0x89   : > { %v237_v38 = vadd.f32 %v228_v36, %v1211_v1  ;;  %v239_v46 = vadd.f32 %v229_v41, %v1209_v0 }
  0x8b   : > { %v226_v34 = vpop.permute.xlu1 %225  ;;  %v224_v35 = vpop.permute.xlu0 %223 }
  0x8c   : > { %v230_v49 = vsel %vm227_vm0, %v224_v35, %v226_v34  ;;  %v242_v53 = vadd.f32 %v226_v34, %v1225_v4 }
  0x8d   : > { %v241_v54 = vadd.f32 %v230_v49, %v1227_v5 }
  0x8f   : > { %v246_v39 = vpop.permute.xlu1 %245  ;;  %v244_v40 = vpop.permute.xlu0 %243 }
  0x90   : > { %v266_v42 = vadd.f32 %v246_v39, %v238_v37  ;;  %v256_v43 = vsel %vm255_vm1, %v244_v40, %v246_v39 }
  0x91   : > { %v1421_v44 = vadd.f32 %v256_v43, %v237_v38 }
  0x92   : > { %279 = vrot.lane.b32.xlu1 %v266_v42, %s1173_s24 }
  0x93   : > { %v250_v47 = vpop.permute.xlu1 %249  ;;  %v248_v48 = vpop.permute.xlu0 %247  ;;  %277 = vrot.lane.b32.xlu0 %v1421_v44, %s1173_s24 }
  0x94   : > { %v268_v50 = vadd.f32 %v250_v47, %v240_v45  ;;  %v257_v51 = vsel %vm255_vm1, %v248_v48, %v250_v47 }
  0x95   : > { %v1430_v52 = vadd.f32 %v257_v51, %v239_v46 }
  0x96   : > { %283 = vrot.lane.b32.xlu1 %v268_v50, %s1173_s24 }
  0x97   : > { %v254_v55 = vpop.permute.xlu1 %253  ;;  %v252_v56 = vpop.permute.xlu0 %251  ;;  %281 = vrot.lane.b32.xlu0 %v1430_v52, %s1173_s24 }
  0x98   : > { %v270_v57 = vadd.f32 %v254_v55, %v242_v53  ;;  %v258_v58 = vsel %vm255_vm1, %v252_v56, %v254_v55 }
  0x99   : > { %v1438_v59 = vadd.f32 %v258_v58, %v241_v54 }
  0x9a   : > { %287 = vrot.lane.b32.xlu1 %v270_v57, %s1173_s24 }
  0x9b   : > { %v380_v60 = vpop.permute.xlu1 %379  ;;  %v378_v61 = vpop.permute.xlu0 %377  ;;  %285 = vrot.lane.b32.xlu0 %v1438_v59, %s1173_s24 }
  0x9c   : > { %v389_v30 = vsel %vm227_vm0, %v378_v61, %v380_v60  ;;  %v399_v31 = vadd.f32 %v380_v60, %v1248_v6 }
  0x9d   : > { %v398_v32 = vadd.f32 %v389_v30, %v1250_v7 }
  0x9e   : > { %301 = vrot.lane.b32.xlu1 %v266_v42, %s1174_s25 }
  0x9f   : > { %v384_v62 = vpop.permute.xlu1 %383  ;;  %v382_v63 = vpop.permute.xlu0 %381  ;;  %299 = vrot.lane.b32.xlu0 %v1421_v44, %s1174_s25 }
  0xa0   : > { %v390_v35 = vsel %vm227_vm0, %v382_v63, %v384_v62  ;;  %v401_v37 = vadd.f32 %v384_v62, %v1256_v8 }
  0xa1   : > { %v400_v6 = vadd.f32 %v390_v35, %v1258_v9 }
  0xa2   : > { %305 = vrot.lane.b32.xlu1 %v268_v50, %s1174_s25 }
  0xa3   : > { %v388_v0 = vpop.permute.xlu1 %387  ;;  %v386_v1 = vpop.permute.xlu0 %385  ;;  %303 = vrot.lane.b32.xlu0 %v1430_v52, %s1174_s25 }
  0xa4   : > { %v391_v41 = vsel %vm227_vm0, %v386_v1, %v388_v0  ;;  %v403_v43 = vadd.f32 %v388_v0, %v1264_v10 }
  0xa5   : > { %v402_v45 = vadd.f32 %v391_v41, %v1266_v11 }
  0xa6   : > { %309 = vrot.lane.b32.xlu1 %v270_v57, %s1174_s25 }
  0xa7   : > { %v407_v2 = vpop.permute.xlu1 %406  ;;  %v405_v3 = vpop.permute.xlu0 %404  ;;  %307 = vrot.lane.b32.xlu0 %v1438_v59, %s1174_s25 }
  0xa8   : > { %v416_v36 = vsel %vm255_vm1, %v405_v3, %v407_v2  ;;  %v426_v38 = vadd.f32 %v407_v2, %v399_v31 }
  0xa9   : > { %v1469_v39 = vadd.f32 %v416_v36, %v398_v32 }
  0xaa   : > { %886 = vrot.lane.b32.xlu1 %v1382_v24, %s1172_s20 }
  0xab   : > { %v411_v4 = vpop.permute.xlu1 %410  ;;  %v409_v5 = vpop.permute.xlu0 %408  ;;  %884 = vrot.lane.b32.xlu0 %v1386_v25, %s1172_s20 }
  0xac   : > { %v417_v42 = vsel %vm255_vm1, %v409_v5, %v411_v4  ;;  %v428_v8 = vadd.f32 %v411_v4, %v401_v37 }
  0xad   : > { %v1478_v46 = vadd.f32 %v417_v42, %v400_v6 }
  0xae   : > { %890 = vrot.lane.b32.xlu1 %v1394_v26, %s1172_s20 }
  0xaf   : > { %v415_v33 = vpop.permute.xlu1 %414  ;;  %v413_v34 = vpop.permute.xlu0 %412  ;;  %888 = vrot.lane.b32.xlu0 %v1398_v27, %s1172_s20 }
  0xb0   : > { %v418_v48 = vsel %vm255_vm1, %v413_v34, %v415_v33  ;;  %v430_v49 = vadd.f32 %v415_v33, %v403_v43 }
  0xb1   : > { %v1484_v50 = vadd.f32 %v418_v48, %v402_v45 }
  0xb2   : > { %894 = vrot.lane.b32.xlu1 %v1406_v28, %s1172_s20 }
  0xb3   : > { %v540_v7 = vpop.permute.xlu1 %539  ;;  %892 = vrot.lane.b32.xlu0 %v1410_v29, %s1172_s20  ;;  %v538_v40 = vpop.permute.xlu0 %537 }
  0xb4   : > { %v549_v56 = vsel %vm227_vm0, %v538_v40, %v540_v7  ;;  %v559_v60 = vadd.f32 %v540_v7, %v1286_v12 }
  0xb5   : > { %v558_v61 = vadd.f32 %v549_v56, %v1290_v13 }
  0xb6   : > { %439 = vrot.lane.b32.xlu1 %v426_v38, %s1173_s24 }
  0xb7   : > { %v544_v9 = vpop.permute.xlu1 %543  ;;  %437 = vrot.lane.b32.xlu0 %v1469_v39, %s1173_s24  ;;  %v542_v47 = vpop.permute.xlu0 %541 }
  0xb8   : > { %v550_v62 = vsel %vm227_vm0, %v542_v47, %v544_v9  ;;  %v561_v1 = vadd.f32 %v544_v9, %v1298_v14 }
  0xb9   : > { %v560_v4 = vadd.f32 %v550_v62, %v1302_v15 }
  0xba   : > { %443 = vrot.lane.b32.xlu1 %v428_v8, %s1173_s24 }
  0xbb   : > { %v548_v10 = vpop.permute.xlu1 %547  ;;  %441 = vrot.lane.b32.xlu0 %v1478_v46, %s1173_s24  ;;  %v546_v51 = vpop.permute.xlu0 %545 }
  0xbc   : > { %v551_v12 = vsel %vm227_vm0, %v546_v51, %v548_v10  ;;  %v563_v31 = vadd.f32 %v548_v10, %v1310_v16 }
  0xbd   : > { %v562_v33 = vadd.f32 %v551_v12, %v1314_v17 }
  0xbe   : > { %447 = vrot.lane.b32.xlu1 %v430_v49, %s1173_s24 }
  0xbf   : > { %v700_v11 = vpop.permute.xlu1 %699  ;;  %445 = vrot.lane.b32.xlu0 %v1484_v50, %s1173_s24  ;;  %v698_v53 = vpop.permute.xlu0 %697 }
  0xc0   : > { %v709_v15 = vsel %vm227_vm0, %v698_v53, %v700_v11  ;;  %v719_v37 = vadd.f32 %v700_v11, %v1322_v18 }
  0xc1   : > { %v718_v6 = vadd.f32 %v709_v15, %v1326_v19 }
  0xc2   : > { %460 = vrot.lane.b32.xlu1 %v426_v38, %s1174_s25 }
  0xc3   : > { %v704_v54 = vpop.permute.xlu1 %703  ;;  %458 = vrot.lane.b32.xlu0 %v1469_v39, %s1174_s25  ;;  %v702_v55 = vpop.permute.xlu0 %701 }
  0xc4   : > { %v710_v17 = vsel %vm227_vm0, %v702_v55, %v704_v54  ;;  %v721_v42 = vadd.f32 %v704_v54, %v1334_v20 }
  0xc6   : > { %464 = vrot.lane.b32.xlu1 %v428_v8, %s1174_s25  ;;  %v720_v8 = vadd.f32 %v710_v17, %v1338_v21 }
  0xc7   : > { %v708_v57 = vpop.permute.xlu1 %707  ;;  %462 = vrot.lane.b32.xlu0 %v1478_v46, %s1174_s25  ;;  %v706_v58 = vpop.permute.xlu0 %705 }
  0xc8   : > { %v711_v19 = vsel %vm227_vm0, %v706_v58, %v708_v57  ;;  %v723_v48 = vadd.f32 %v708_v57, %v1346_v22 }
  0xc9   : > { %v722_v10 = vadd.f32 %v711_v19, %v1350_v23 }
  0xca   : > { %468 = vrot.lane.b32.xlu1 %v430_v49, %s1174_s25 }
  0xcb   : > { %v567_v63 = vpop.permute.xlu1 %566  ;;  %466 = vrot.lane.b32.xlu0 %v1484_v50, %s1174_s25  ;;  %v565_v0 = vpop.permute.xlu0 %564 }
  0xcc   : > { %v586_v2 = vadd.f32 %v567_v63, %v559_v60  ;;  %v576_v3 = vsel %vm255_vm1, %v565_v0, %v567_v63 }
  0xcd   : > { %v1507_v5 = vadd.f32 %v576_v3, %v558_v61 }
  0xce   : > { %599 = vrot.lane.b32.xlu1 %v586_v2, %s1173_s24 }
  0xcf   : > { %v571_v13 = vpop.permute.xlu1 %570  ;;  %597 = vrot.lane.b32.xlu0 %v1507_v5, %s1173_s24  ;;  %v569_v30 = vpop.permute.xlu0 %568 }
  0xd0   : > { %v588_v32 = vadd.f32 %v571_v13, %v561_v1  ;;  %v577_v14 = vsel %vm255_vm1, %v569_v30, %v571_v13 }
  0xd1   : > { %v1516_v34 = vadd.f32 %v577_v14, %v560_v4 }
  0xd2   : > { %603 = vrot.lane.b32.xlu1 %v588_v32, %s1173_s24 }
  0xd3   : > { %v575_v35 = vpop.permute.xlu1 %574  ;;  %601 = vrot.lane.b32.xlu0 %v1516_v34, %s1173_s24  ;;  %v573_v36 = vpop.permute.xlu0 %572 }
  0xd4   : > { %v590_v38 = vadd.f32 %v575_v35, %v563_v31  ;;  %v578_v16 = vsel %vm255_vm1, %v573_v36, %v575_v35 }
  0xd5   : > { %v1525_v7 = vadd.f32 %v578_v16, %v562_v33 }
  0xd6   : > { %607 = vrot.lane.b32.xlu1 %v590_v38, %s1173_s24 }
  0xd7   : > { %v727_v40 = vpop.permute.xlu1 %726  ;;  %605 = vrot.lane.b32.xlu0 %v1525_v7, %s1173_s24  ;;  %v725_v41 = vpop.permute.xlu0 %724 }
  0xd8   : > { %v746_v43 = vadd.f32 %v727_v40, %v719_v37  ;;  %v736_v18 = vsel %vm255_vm1, %v725_v41, %v727_v40 }
  0xd9   : > { %v1534_v45 = vadd.f32 %v736_v18, %v718_v6 }
  0xda   : > { %759 = vrot.lane.b32.xlu1 %v746_v43, %s1173_s24 }
  0xdb   : > { %v731_v9 = vpop.permute.xlu1 %730  ;;  %757 = vrot.lane.b32.xlu0 %v1534_v45, %s1173_s24  ;;  %v729_v47 = vpop.permute.xlu0 %728 }
  0xdc   : > { %v748_v49 = vadd.f32 %v731_v9, %v721_v42  ;;  %v737_v20 = vsel %vm255_vm1, %v729_v47, %v731_v9 }
  0xdd   : > { %v1543_v51 = vadd.f32 %v737_v20, %v720_v8 }
  0xde   : > { %763 = vrot.lane.b32.xlu1 %v748_v49, %s1173_s24 }
  0xdf   : > { %v735_v21 = vpop.permute.xlu1 %734  ;;  %761 = vrot.lane.b32.xlu0 %v1543_v51, %s1173_s24  ;;  %v733_v11 = vpop.permute.xlu0 %732 }
  0xe0   : > { %v750_v53 = vadd.f32 %v735_v21, %v723_v48  ;;  %v738_v54 = vsel %vm255_vm1, %v733_v11, %v735_v21 }
  0xe1   : > { %v1549_v55 = vadd.f32 %v738_v54, %v722_v10 }
  0xe2   : > { %767 = vrot.lane.b32.xlu1 %v750_v53, %s1173_s24 }
  0xe3   : > { %765 = vrot.lane.b32.xlu0 %v1549_v55, %s1173_s24  ;;  %v860_v22 = vpop.permute.xlu1 %859  ;;  %v858_v23 = vpop.permute.xlu0 %857 }
  0xe4   : > { %v869_v42 = vsel %vm227_vm0, %v858_v23, %v860_v22 }
  0xe5   : > { %v878_v47 = vadd.f32 %v869_v42, %v1386_v25 }
  0xe6   : > { %620 = vrot.lane.b32.xlu1 %v586_v2, %s1174_s25 }
  0xe7   : > { %618 = vrot.lane.b32.xlu0 %v1507_v5, %s1174_s25  ;;  %v864_v56 = vpop.permute.xlu1 %863  ;;  %v862_v57 = vpop.permute.xlu0 %861 }
  0xe8   : > { %v881_v21 = vadd.f32 %v864_v56, %v1394_v26  ;;  %v870_v11 = vsel %vm227_vm0, %v862_v57, %v864_v56 }
  0xea   : > { %624 = vrot.lane.b32.xlu1 %v588_v32, %s1174_s25 }
  0xeb   : > { %622 = vrot.lane.b32.xlu0 %v1516_v34, %s1174_s25  ;;  %v1572_v58 = vpop.permute.xlu1 %867  ;;  %v866_v60 = vpop.permute.xlu0 %865 }
  0xec   : > { %v871_v57 = vsel %vm227_vm0, %v866_v60, %v1572_v58 }
  0xed   : > { %v882_v60 = vadd.f32 %v871_v57, %v1410_v29 }
  0xee   : > { %628 = vrot.lane.b32.xlu1 %v590_v38, %s1174_s25 }
  0xef   : > { %626 = vrot.lane.b32.xlu0 %v1525_v7, %s1174_s25 }
  0xf2   : > { %780 = vrot.lane.b32.xlu1 %v746_v43, %s1174_s25 }
  0xf3   : > { %778 = vrot.lane.b32.xlu0 %v1534_v45, %s1174_s25 }
  0xf6   : > { %784 = vrot.lane.b32.xlu1 %v748_v49, %s1174_s25 }
  0xf7   : > { %782 = vrot.lane.b32.xlu0 %v1543_v51, %s1174_s25 }
  0xfa   : > { %788 = vrot.lane.b32.xlu1 %v750_v53, %s1174_s25 }
  0xfb   : > { %786 = vrot.lane.b32.xlu0 %v1549_v55, %s1174_s25 }
 0x104   : > { %v280_v61 = vpop.permute.xlu1 %279 }
 0x105   : > { %v278_v62 = vpop.permute.xlu0 %277 }
 0x106   : > { %v290_v63 = vsel %vm289_vm2, %v278_v62, %v280_v61 }
 0x107   : > { %v296_v30 = vadd.f32 %v290_v63, %v1421_v44  ;;  %v880_v63 = vadd.f32 %v870_v11, %v1398_v27 }
 0x108   : > { %v284_v0 = vpop.permute.xlu1 %283 }
 0x109   : > { %v282_v1 = vpop.permute.xlu0 %281 }
 0x10a   : > { %v291_v2 = vsel %vm289_vm2, %v282_v1, %v284_v0 }
 0x10b   : > { %v297_v15 = vadd.f32 %v291_v2, %v1430_v52  ;;  %v879_v52 = vadd.f32 %v860_v22, %v1382_v24 }
 0x10c   : > { %v288_v3 = vpop.permute.xlu1 %287 }
 0x10d   : > { %v286_v4 = vpop.permute.xlu0 %285 }
 0x10e   : > { %v292_v12 = vsel %vm289_vm2, %v286_v4, %v288_v3  ;;  %v883_v3 = vadd.f32 %v1572_v58, %v1406_v28 }
 0x10f   : > { %v298_v38 = vadd.f32 %v292_v12, %v1438_v59 }
 0x110   : > { %v302_v13 = vpop.permute.xlu1 %301 }
 0x111   : > { %v300_v31 = vpop.permute.xlu0 %299 }
 0x112   : > { %v312_v32 = vsel %vm311_vm3, %v300_v31, %v302_v13 }
 0x113   : > { %v318_v14 = vadd.f32 %v312_v32, %v296_v30 }
 0x114   : > { %v306_v33 = vpop.permute.xlu1 %305 }
 0x115   : > { %v304_v35 = vpop.permute.xlu0 %303  ;;  %v325_v6 = vrot.slane %v318_v14, 1  ;;  %v337_v17 = vrot.slane %v318_v14, 2 }
 0x116   : > { %v313_v36 = vsel %vm311_vm3, %v304_v35, %v306_v33 }
 0x117   : > { %v319_v37 = vadd.f32 %v313_v36, %v297_v15 }
 0x118   : > { %v310_v16 = vpop.permute.xlu1 %309 }
 0x119   : > { %v326_v40 = vrot.slane %v319_v37, 1  ;;  %v338_v44 = vrot.slane %v319_v37, 2  ;;  %v308_v41 = vpop.permute.xlu0 %307 }
 0x11a   : > { %v314_v43 = vsel %vm311_vm3, %v308_v41, %v310_v16 }
 0x11b   : > { %v327_v18 = vsel %vm324_vm4, %v325_v6, %v326_v40  ;;  %v339_v8 = vsel %vm336_vm5, %v337_v17, %v338_v44  ;;  %v320_v19 = vadd.f32 %v314_v43, %v298_v38 }
 0x11c   : > { %v333_v59 = vadd.f32 %v327_v18, %v318_v14  ;;  %v887_v9 = vpop.permute.xlu1 %886 }
 0x11d   : > { %v328_v48 = vrot.slane %v320_v19, 1  ;;  %v340_v49 = vrot.slane %v320_v19, 2  ;;  %v906_v20 = vadd.f32 %v887_v9, %v879_v52  ;;  %v885_v10 = vpop.permute.xlu0 %884 }
 0x11e   : > { %v345_v53 = vadd.f32 %v339_v8, %v333_v59  ;;  %v896_v24 = vsel %vm255_vm1, %v885_v10, %v887_v9 }
 0x11f   : > { %v329_v54 = vsel %vm324_vm4, %v326_v40, %v328_v48  ;;  %v335_v22 = vadd.f32 %v328_v48, %v320_v19  ;;  %v341_v23 = vsel %vm336_vm5, %v338_v44, %v340_v49  ;;  %v1593_v61 = vadd.f32 %v896_v24, %v878_v47  ;;  %919 = vrot.lane.b32.xlu1 %v906_v20, %s1173_s24 }
 0x120   : > { %v334_v25 = vadd.f32 %v329_v54, %v319_v37  ;;  %v891_v62 = vpop.permute.xlu1 %890  ;;  %v352_v13 = vrot.slane %v345_v53, 3  ;;  %v362_v30 = vrot.slane %v345_v53, 6 }
 0x121   : > { %v347_v26 = vadd.f32 %v340_v49, %v335_v22  ;;  %v908_v0 = vadd.f32 %v891_v62, %v881_v21  ;;  %917 = vrot.lane.b32.xlu0 %v1593_v61, %s1173_s24  ;;  %v889_v56 = vpop.permute.xlu0 %888 }
 0x122   : > { %v346_v1 = vadd.f32 %v341_v23, %v334_v25  ;;  %v897_v2 = vsel %vm255_vm1, %v889_v56, %v891_v62 }
 0x123   : > { %v355_v4 = vrot.slane %v347_v26, 3  ;;  %v365_v12 = vrot.slane %v347_v26, 6  ;;  %v1604_v27 = vadd.f32 %v897_v2, %v880_v63  ;;  %923 = vrot.lane.b32.xlu1 %v908_v0, %s1173_s24 }
 0x124   : > { %v353_v31 = vrot.slane %v346_v1, 3  ;;  %v363_v32 = vrot.slane %v346_v1, 6  ;;  %v895_v14 = vpop.permute.xlu1 %894 }
 0x125   : > { %v910_v33 = vadd.f32 %v895_v14, %v883_v3  ;;  %921 = vrot.lane.b32.xlu0 %v1604_v27, %s1173_s24  ;;  %v893_v15 = vpop.permute.xlu0 %892 }
 0x126   : > { %v354_v28 = vsel %vm351_vm6, %v352_v13, %v353_v31  ;;  %v356_v58 = vsel %vm351_vm6, %v353_v31, %v355_v4  ;;  %v364_v35 = vsel %vm361_vm7, %v362_v30, %v363_v32  ;;  %v366_v36 = vsel %vm361_vm7, %v363_v32, %v365_v12 }
 0x127   : > { %v359_v37 = vadd.f32 %v354_v28, %v345_v53  ;;  %v360_v38 = vadd.f32 %v356_v58, %v346_v1  ;;  %v898_v16 = vsel %vm255_vm1, %v893_v15, %v895_v14  ;;  %927 = vrot.lane.b32.xlu1 %v910_v33, %s1173_s24 }
 0x128   : > { %v1616_v29 = vadd.f32 %v898_v16, %v882_v60  ;;  %v440_v6 = vpop.permute.xlu1 %439 }
 0x129   : > { %v1618_v17 = vadd.f32 %v364_v35, %v359_v37  ;;  %v1620_v40 = vadd.f32 %v366_v36, %v360_v38  ;;  %v438_v44 = vpop.permute.xlu0 %437 }
 0x12a   : > { %925 = vrot.lane.b32.xlu0 %v1616_v29, %s1173_s24  ;;  %v449_v41 = vsel %vm289_vm2, %v438_v44, %v440_v6 }
 0x12b   : > { %940 = vrot.lane.b32.xlu1 %v906_v20, %s1174_s25  ;;  %v455_v48 = vadd.f32 %v449_v41, %v1469_v39 }
 0x12c   : > { %v444_v42 = vpop.permute.xlu1 %443 }
 0x12d   : > { %v442_v43 = vpop.permute.xlu0 %441 }
 0x12e   : > { %938 = vrot.lane.b32.xlu0 %v1593_v61, %s1174_s25  ;;  %v450_v52 = vsel %vm289_vm2, %v442_v43, %v444_v42 }
 0x12f   : > { %944 = vrot.lane.b32.xlu1 %v908_v0, %s1174_s25  ;;  %v456_v20 = vadd.f32 %v450_v52, %v1478_v46 }
 0x130   : > { %v448_v18 = vpop.permute.xlu1 %447 }
 0x131   : > { %v446_v8 = vpop.permute.xlu0 %445 }
 0x132   : > { %942 = vrot.lane.b32.xlu0 %v1604_v27, %s1174_s25  ;;  %v451_v19 = vsel %vm289_vm2, %v446_v8, %v448_v18  ;;  %v1651_v18 = vmul.f32 0.012345679, %v1618_v17  ;;  %v1654_v8 = vmul.f32 0.012345679, %v1620_v40 }
 0x133   : > { %948 = vrot.lane.b32.xlu1 %v910_v33, %s1174_s25  ;;  %v457_v24 = vadd.f32 %v451_v19, %v1484_v50 }
 0x134   : > { %v461_v59 = vpop.permute.xlu1 %460 }
 0x135   : > { %v459_v9 = vpop.permute.xlu0 %458 }
 0x136   : > { %946 = vrot.lane.b32.xlu0 %v1616_v29, %s1174_s25  ;;  %v470_v47 = vsel %vm311_vm3, %v459_v9, %v461_v59 }
 0x137   : > { %v476_v10 = vadd.f32 %v470_v47, %v455_v48 }
 0x138   : > { %v465_v49 = vpop.permute.xlu1 %464 }
 0x139   : > { %v463_v21 = vpop.permute.xlu0 %462  ;;  %v482_v22 = vrot.slane %v476_v10, 1  ;;  %v493_v23 = vrot.slane %v476_v10, 2 }
 0x13a   : > { %v471_v11 = vsel %vm311_vm3, %v463_v21, %v465_v49 }
 0x13b   : > { %v477_v53 = vadd.f32 %v471_v11, %v456_v20 }
 0x13c   : > { %v469_v54 = vpop.permute.xlu1 %468 }
 0x13d   : > { %v483_v25 = vrot.slane %v477_v53, 1  ;;  %v494_v62 = vrot.slane %v477_v53, 2  ;;  %v467_v63 = vpop.permute.xlu0 %466 }
 0x13e   : > { %v472_v26 = vsel %vm311_vm3, %v467_v63, %v469_v54 }
 0x13f   : > { %v484_v39 = vsel %vm324_vm4, %v482_v22, %v483_v25  ;;  %v495_v0 = vsel %vm336_vm5, %v493_v23, %v494_v62  ;;  %v478_v46 = vadd.f32 %v472_v26, %v457_v24 }
 0x140   : > { %v490_v56 = vadd.f32 %v484_v39, %v476_v10  ;;  %v600_v57 = vpop.permute.xlu1 %599 }
 0x141   : > { %v485_v1 = vrot.slane %v478_v46, 1  ;;  %v496_v2 = vrot.slane %v478_v46, 2  ;;  %v598_v3 = vpop.permute.xlu0 %597 }
 0x142   : > { %v501_v4 = vadd.f32 %v495_v0, %v490_v56  ;;  %v609_v26 = vsel %vm289_vm2, %v598_v3, %v600_v57 }
 0x143   : > { %v486_v50 = vsel %vm324_vm4, %v483_v25, %v485_v1  ;;  %v492_v12 = vadd.f32 %v485_v1, %v478_v46  ;;  %v497_v13 = vsel %vm336_vm5, %v494_v62, %v496_v2 }
 0x144   : > { %v491_v30 = vadd.f32 %v486_v50, %v477_v53  ;;  %v604_v31 = vpop.permute.xlu1 %603  ;;  %v507_v28 = vrot.slane %v501_v4, 3  ;;  %v516_v58 = vrot.slane %v501_v4, 6 }
 0x145   : > { %v503_v32 = vadd.f32 %v496_v2, %v492_v12  ;;  %v602_v14 = vpop.permute.xlu0 %601 }
 0x146   : > { %v502_v60 = vadd.f32 %v497_v13, %v491_v30  ;;  %v610_v63 = vsel %vm289_vm2, %v602_v14, %v604_v31 }
 0x147   : > { %v510_v33 = vrot.slane %v503_v32, 3  ;;  %v519_v15 = vrot.slane %v503_v32, 6  ;;  %v616_v0 = vadd.f32 %v610_v63, %v1516_v34 }
 0x148   : > { %v508_v35 = vrot.slane %v502_v60, 3  ;;  %v517_v36 = vrot.slane %v502_v60, 6  ;;  %v608_v37 = vpop.permute.xlu1 %607 }
 0x149   : > { %v606_v38 = vpop.permute.xlu0 %605 }
 0x14a   : > { %v509_v16 = vsel %vm351_vm6, %v507_v28, %v508_v35  ;;  %v511_v6 = vsel %vm351_vm6, %v508_v35, %v510_v33  ;;  %v518_v44 = vsel %vm361_vm7, %v516_v58, %v517_v36  ;;  %v520_v41 = vsel %vm361_vm7, %v517_v36, %v519_v15 }
 0x14b   : > { %v514_v42 = vadd.f32 %v509_v16, %v501_v4  ;;  %v515_v43 = vadd.f32 %v511_v6, %v502_v60  ;;  %v611_v56 = vsel %vm289_vm2, %v606_v38, %v608_v37  ;;  %v615_v4 = vadd.f32 %v609_v26, %v1507_v5 }
 0x14c   : > { %v760_v52 = vpop.permute.xlu1 %759  ;;  %v617_v13 = vadd.f32 %v611_v56, %v1525_v7 }
 0x14d   : > { %v1656_v19 = vadd.f32 %v518_v44, %v514_v42  ;;  %v1658_v59 = vadd.f32 %v520_v41, %v515_v43  ;;  %v758_v9 = vpop.permute.xlu0 %757 }
 0x14e   : > { %v769_v34 = vsel %vm289_vm2, %v758_v9, %v760_v52 }
 0x14f   : > { %v1661_v47 = vmul.f32 0.012345679, %v1656_v19  ;;  %v1664_v48 = vmul.f32 0.012345679, %v1658_v59  ;;  %v1668_v49 = vmul.f32 %v1651_v18, %v1656_v19  ;;  %v1672_v20 = vmul.f32 %v1654_v8, %v1658_v59 }
 0x150   : > { %v764_v10 = vpop.permute.xlu1 %763  ;;  %v775_v58 = vadd.f32 %v769_v34, %v1534_v45 }
 0x151   : > { %v762_v21 = vpop.permute.xlu0 %761  ;;  %v1676_v11 = vmul.f32 %v1661_v47, %v1618_v17  ;;  %v1680_v53 = vmul.f32 %v1664_v48, %v1620_v40  ;;  %v1684_v24 = vmul.f32 %v1661_v47, %v1651_v18  ;;  %v1688_v22 = vmul.f32 %v1664_v48, %v1654_v8 }
 0x152   : > { %v770_v28 = vsel %vm289_vm2, %v762_v21, %v764_v10 }
 0x153   : > { %v776_v6 = vadd.f32 %v770_v28, %v1543_v51  ;;  %v1023_v28 = vmul.f32 2.0, %v1651_v18 }
 0x154   : > { %v768_v54 = vpop.permute.xlu1 %767 }
 0x155   : > { %v766_v23 = vpop.permute.xlu0 %765 }
 0x156   : > { %v771_v21 = vsel %vm289_vm2, %v766_v23, %v768_v54 }
 0x157   : > { %v777_v56 = vadd.f32 %v771_v21, %v1549_v55 }
 0x158   : > { %v621_v25 = vpop.permute.xlu1 %620 }
 0x159   : > { %v619_v62 = vpop.permute.xlu0 %618 }
 0x15a   : > { %v630_v1 = vsel %vm311_vm3, %v619_v62, %v621_v25 }
 0x15b   : > { %v636_v30 = vadd.f32 %v630_v1, %v615_v4 }
 0x15c   : > { %v625_v39 = vpop.permute.xlu1 %624 }
 0x15d   : > { %v623_v46 = vpop.permute.xlu0 %622  ;;  %v642_v60 = vrot.slane %v636_v30, 1  ;;  %v653_v9 = vrot.slane %v636_v30, 2 }
 0x15e   : > { %v631_v2 = vsel %vm311_vm3, %v623_v46, %v625_v39 }
 0x15f   : > { %v637_v50 = vadd.f32 %v631_v2, %v616_v0 }
 0x160   : > { %v629_v12 = vpop.permute.xlu1 %628 }
 0x161   : > { %v627_v31 = vpop.permute.xlu0 %626  ;;  %v643_v3 = vrot.slane %v637_v50, 1  ;;  %v654_v44 = vrot.slane %v637_v50, 2 }
 0x162   : > { %v632_v57 = vsel %vm311_vm3, %v627_v31, %v629_v12 }
 0x163   : > { %v638_v32 = vadd.f32 %v632_v57, %v617_v13  ;;  %v644_v7 = vsel %vm324_vm4, %v642_v60, %v643_v3  ;;  %v655_v63 = vsel %vm336_vm5, %v653_v9, %v654_v44 }
 0x164   : > { %v781_v14 = vpop.permute.xlu1 %780  ;;  %v650_v43 = vadd.f32 %v644_v7, %v636_v30 }
 0x165   : > { %v645_v33 = vrot.slane %v638_v32, 1  ;;  %v779_v15 = vpop.permute.xlu0 %778  ;;  %v656_v36 = vrot.slane %v638_v32, 2 }
 0x166   : > { %v790_v5 = vsel %vm311_vm3, %v779_v15, %v781_v14  ;;  %v661_v46 = vadd.f32 %v655_v63, %v650_v43  ;;  %v1036_v43 = vmul.f32 2.0, %v1664_v48 }
 0x167   : > { %v646_v35 = vsel %vm324_vm4, %v643_v3, %v645_v33  ;;  %v652_v38 = vadd.f32 %v645_v33, %v638_v32  ;;  %v796_v41 = vadd.f32 %v790_v5, %v775_v58  ;;  %v657_v10 = vsel %vm336_vm5, %v654_v44, %v656_v36 }
 0x168   : > { %v651_v37 = vadd.f32 %v646_v35, %v637_v50  ;;  %v785_v16 = vpop.permute.xlu1 %784  ;;  %v667_v54 = vrot.slane %v661_v46, 3  ;;  %v676_v15 = vrot.slane %v661_v46, 6 }
 0x169   : > { %v783_v42 = vpop.permute.xlu0 %782  ;;  %v663_v62 = vadd.f32 %v656_v36, %v652_v38  ;;  %v802_v26 = vrot.slane %v796_v41, 1  ;;  %v813_v30 = vrot.slane %v796_v41, 2  ;;  %v1024_v38 = vmul.f32 2.0, %v1654_v8 }
 0x16a   : > { %v791_v52 = vsel %vm311_vm3, %v783_v42, %v785_v16  ;;  %v662_v25 = vadd.f32 %v657_v10, %v651_v37  ;;  %v1029_v16 = vmul.f32 %v1651_v18, %v1651_v18 }
 0x16b   : > { %v797_v45 = vadd.f32 %v791_v52, %v776_v6  ;;  %v670_v4 = vrot.slane %v663_v62, 3  ;;  %v679_v34 = vrot.slane %v663_v62, 6  ;;  %v1035_v6 = vmul.f32 2.0, %v1661_v47 }
 0x16c   : > { %v789_v0 = vpop.permute.xlu1 %788  ;;  %v668_v2 = vrot.slane %v662_v25, 3  ;;  %v677_v14 = vrot.slane %v662_v25, 6  ;;  %v1030_v62 = vmul.f32 %v1654_v8, %v1654_v8  ;;  %v1038_v8 = vmul.f32 %v1036_v43, %v1658_v59 }
 0x16d   : > { %v803_v39 = vrot.slane %v797_v45, 1  ;;  %v787_v51 = vpop.permute.xlu0 %786  ;;  %v814_v12 = vrot.slane %v797_v45, 2 }
 0x16e   : > { %v792_v50 = vsel %vm311_vm3, %v787_v51, %v789_v0  ;;  %v669_v3 = vsel %vm351_vm6, %v667_v54, %v668_v2  ;;  %v671_v32 = vsel %vm351_vm6, %v668_v2, %v670_v4  ;;  %v680_v42 = vsel %vm361_vm7, %v677_v14, %v679_v34 }
 0x16f   : > { %v804_v1 = vsel %vm324_vm4, %v802_v26, %v803_v39  ;;  %v798_v13 = vadd.f32 %v792_v50, %v777_v56  ;;  %v815_v55 = vsel %vm336_vm5, %v813_v30, %v814_v12  ;;  %v674_v7 = vadd.f32 %v669_v3, %v661_v46 }
 0x170   : > { %v810_v23 = vadd.f32 %v804_v1, %v796_v41  ;;  %v675_v35 = vadd.f32 %v671_v32, %v662_v25  ;;  %v678_v41 = vsel %vm361_vm7, %v676_v15, %v677_v14  ;;  %v1025_v25 = vmul.f32 %v1023_v28, %v1618_v17 }
 0x171   : > { %v805_v31 = vrot.slane %v798_v13, 1  ;;  %v816_v57 = vrot.slane %v798_v13, 2  ;;  %v683_v18 = vadd.f32 %v678_v41, %v674_v7  ;;  %v1026_v26 = vmul.f32 %v1024_v38, %v1620_v40 }
 0x172   : > { %v821_v5 = vadd.f32 %v815_v55, %v810_v23  ;;  %v684_v63 = vadd.f32 %v680_v42, %v675_v35  ;;  %v1041_v46 = vmul.f32 %v1661_v47, %v1661_v47  ;;  %v1042_v56 = vmul.f32 %v1664_v48, %v1664_v48 }
 0x173   : > { %v806_v60 = vsel %vm324_vm4, %v803_v39, %v805_v31  ;;  %v812_v33 = vadd.f32 %v805_v31, %v798_v13  ;;  %v817_v36 = vsel %vm336_vm5, %v814_v12, %v816_v57  ;;  %v1037_v2 = vmul.f32 %v1035_v6, %v1656_v19 }
 0x174   : > { %v811_v58 = vadd.f32 %v806_v60, %v797_v45  ;;  %v827_v9 = vrot.slane %v821_v5, 3  ;;  %v836_v39 = vrot.slane %v821_v5, 6  ;;  %v1027_v50 = vsub.f32 %v683_v18, %v1025_v25 }
 0x175   : > { %v823_v37 = vadd.f32 %v816_v57, %v812_v33  ;;  %v1028_v12 = vsub.f32 %v684_v63, %v1026_v26  ;;  %v1031_v23 = vmul.f32 81.0, %v1029_v16  ;;  %v1032_v30 = vmul.f32 81.0, %v1030_v62 }
 0x176   : > { %v822_v44 = vadd.f32 %v817_v36, %v811_v58  ;;  %v1043_v47 = vmul.f32 81.0, %v1041_v46  ;;  %v1044_v31 = vmul.f32 81.0, %v1042_v56 }
 0x177   : > { %v830_v52 = vrot.slane %v823_v37, 3  ;;  %v839_v21 = vrot.slane %v823_v37, 6  ;;  %v1033_v3 = vadd.f32 %v1031_v23, %v1027_v50  ;;  %v1034_v32 = vadd.f32 %v1032_v30, %v1028_v12 }
 0x178   : > { %v828_v10 = vrot.slane %v822_v44, 3  ;;  %v837_v45 = vrot.slane %v822_v44, 6 }
 0x17a   : > { %v829_v0 = vsel %vm351_vm6, %v827_v9, %v828_v10  ;;  %v831_v51 = vsel %vm351_vm6, %v828_v10, %v830_v52  ;;  %v838_v4 = vsel %vm361_vm7, %v836_v39, %v837_v45  ;;  %v840_v40 = vsel %vm361_vm7, %v837_v45, %v839_v21 }
 0x17b   : > { %v834_v1 = vadd.f32 %v829_v0, %v821_v5  ;;  %v835_v17 = vadd.f32 %v831_v51, %v822_v44 }
 0x17d   : > { %v843_v13 = vadd.f32 %v838_v4, %v834_v1  ;;  %v844_v54 = vadd.f32 %v840_v40, %v835_v17 }
 0x17f   : > { %v1039_v57 = vsub.f32 %v843_v13, %v1037_v2  ;;  %v1040_v48 = vsub.f32 %v844_v54, %v1038_v8 }
 0x181   : > { %v1045_v34 = vadd.f32 %v1043_v47, %v1039_v57  ;;  %v1046_v19 = vadd.f32 %v1044_v31, %v1040_v48 }
 0x183   : > { %v1049_v14 = vmul.f32 %v1045_v34, %v1033_v3  ;;  %v1050_v59 = vmul.f32 %v1046_v19, %v1034_v32 }
 0x185   : > { %v1051_v4 = vadd.f32 1e-05, %v1049_v14  ;;  %v1052_v40 = vadd.f32 1e-05, %v1050_v59 }
 0x187   : > { %1159 = vrcp.f32 %v1051_v4 }
 0x188   : > { %1161 = vrcp.f32 %v1052_v40 }
 0x191   : > { %v920_v55 = vpop.permute.xlu1 %919 }
 0x193   : > { %v918_v60 = vpop.permute.xlu0 %917 }
 0x194   : > { %v929_v7 = vsel %vm289_vm2, %v918_v60, %v920_v55  ;;  %v1019_v55 = vmul.f32 81.0, %v1684_v24  ;;  %v1020_v60 = vmul.f32 81.0, %v1688_v22 }
 0x195   : > { %v924_v33 = vpop.permute.xlu1 %923  ;;  %v935_v38 = vadd.f32 %v929_v7, %v1593_v61 }
 0x197   : > { %v922_v15 = vpop.permute.xlu0 %921 }
 0x198   : > { %v930_v36 = vsel %vm289_vm2, %v922_v15, %v924_v33 }
 0x199   : > { %v928_v28 = vpop.permute.xlu1 %927  ;;  %v936_v6 = vadd.f32 %v930_v36, %v1604_v27 }
 0x19c   : > { %v926_v5 = vpop.permute.xlu0 %925 }
 0x19d   : > { %v941_v58 = vpop.permute.xlu1 %940  ;;  %v931_v42 = vsel %vm289_vm2, %v926_v5, %v928_v28 }
 0x19e   : > { %v937_v9 = vadd.f32 %v931_v42, %v1616_v29 }
 0x1a0   : > { %v939_v35 = vpop.permute.xlu0 %938 }
 0x1a1   : > { %v950_v37 = vsel %vm311_vm3, %v939_v35, %v941_v58  ;;  %v945_v16 = vpop.permute.xlu1 %944  ;;  %v1160_v58 = vpop.eup %1159 }
 0x1a2   : > { %v956_v44 = vadd.f32 %v950_v37, %v935_v38  ;;  %v1162_v36 = vpop.eup %1161 }
 0x1a4   : > { %v943_v41 = vpop.permute.xlu0 %942  ;;  %v962_v10 = vrot.slane %v956_v44, 1  ;;  %v973_v26 = vrot.slane %v956_v44, 2 }
 0x1a5   : > { %v951_v43 = vsel %vm311_vm3, %v943_v41, %v945_v16  ;;  %v949_v21 = vpop.permute.xlu1 %948 }
 0x1a6   : > { %v957_v52 = vadd.f32 %v951_v43, %v936_v6 }
 0x1a8   : > { %v963_v45 = vrot.slane %v957_v52, 1  ;;  %v947_v25 = vpop.permute.xlu0 %946  ;;  %v974_v18 = vrot.slane %v957_v52, 2 }
 0x1a9   : > { %v952_v62 = vsel %vm311_vm3, %v947_v25, %v949_v21 }
 0x1aa   : > { %v964_v61 = vsel %vm324_vm4, %v962_v10, %v963_v45  ;;  %v958_v63 = vadd.f32 %v952_v62, %v937_v9  ;;  %v975_v51 = vsel %vm336_vm5, %v973_v26, %v974_v18 }
 0x1ab   : > { %v970_v27 = vadd.f32 %v964_v61, %v956_v44 }
 0x1ac   : > { %v965_v39 = vrot.slane %v958_v63, 1  ;;  %v976_v0 = vrot.slane %v958_v63, 2 }
 0x1ad   : > { %v981_v29 = vadd.f32 %v975_v51, %v970_v27 }
 0x1ae   : > { %v966_v46 = vsel %vm324_vm4, %v963_v45, %v965_v39  ;;  %v972_v56 = vadd.f32 %v965_v39, %v958_v63  ;;  %v977_v17 = vsel %vm336_vm5, %v974_v18, %v976_v0 }
 0x1af   : > { %v971_v1 = vadd.f32 %v966_v46, %v957_v52  ;;  %v987_v12 = vrot.slane %v981_v29, 3  ;;  %v996_v30 = vrot.slane %v981_v29, 6 }
 0x1b0   : > { %v983_v2 = vadd.f32 %v976_v0, %v972_v56 }
 0x1b1   : > { %v982_v8 = vadd.f32 %v977_v17, %v971_v1 }
 0x1b2   : > { %v990_v50 = vrot.slane %v983_v2, 3  ;;  %v999_v23 = vrot.slane %v983_v2, 6 }
 0x1b3   : > { %v988_v13 = vrot.slane %v982_v8, 3  ;;  %v997_v54 = vrot.slane %v982_v8, 6 }
 0x1b5   : > { %v989_v47 = vsel %vm351_vm6, %v987_v12, %v988_v13  ;;  %v991_v31 = vsel %vm351_vm6, %v988_v13, %v990_v50  ;;  %v998_v3 = vsel %vm361_vm7, %v996_v30, %v997_v54  ;;  %v1000_v32 = vsel %vm361_vm7, %v997_v54, %v999_v23 }
 0x1b6   : > { %v994_v57 = vadd.f32 %v989_v47, %v981_v29  ;;  %v995_v48 = vadd.f32 %v991_v31, %v982_v8 }
 0x1b8   : > { %v1003_v34 = vadd.f32 %v998_v3, %v994_v57  ;;  %v1004_v19 = vadd.f32 %v1000_v32, %v995_v48 }
 0x1ba   : > { %v1011_v14 = vsub.f32 %v1003_v34, %v1676_v11  ;;  %v1012_v59 = vsub.f32 %v1004_v19, %v1680_v53  ;;  %v1142_v11 = vld [vmem:[%s1776_s2] ss:$0 sm:$0xff] }
 0x1bc   : > { %v1015_v33 = vsub.f32 %v1011_v14, %v1668_v49  ;;  %v1016_v15 = vsub.f32 %v1012_v59, %v1672_v20 }
 0x1be   : > { %v1021_v28 = vadd.f32 %v1019_v55, %v1015_v33  ;;  %v1022_v5 = vadd.f32 %v1020_v60, %v1016_v15 }
 0x1c0   : > { %v1047_v7 = vmul.f32 %v1021_v28, %v1021_v28  ;;  %v1048_v35 = vmul.f32 %v1022_v5, %v1022_v5 }
 0x1c2   : > { %v1054_v53 = vmul.f32 %v1160_v58, %v1047_v7  ;;  %v1056_v24 = vmul.f32 %v1162_v36, %v1048_v35 }
 0x1c4   : > { %v1064_v37 = vmul.f32 %v1142_v11, %v1054_v53  ;;  %v1065_v22 = vmul.f32 %v1142_v11, %v1056_v24 }
 0x1c6   : > { %v1066_v38 = vadd.f32 %v1065_v22, %v1064_v37 }
 0x1c8   : > { %v1067_v16 = vrot.slane %v1066_v38, 4 }
 0x1ca   : > { %v1068_v49 = vadd.f32 %v1067_v16, %v1066_v38 }
 0x1cc   : > { %v1069_v20 = vrot.slane %v1068_v49, 2 }
 0x1ce   : > { %v1070_v6 = vadd.f32 %v1069_v20, %v1068_v49 }
 0x1d0   : > { %v1071_v44 = vrot.slane %v1070_v6, 1 }
 0x1d2   : > { %v1072_v41 = vadd.f32 %v1071_v44, %v1070_v6 }
 0x1d4   : > { %1073 = vst [vmem:[%s196_s30] sm:$0x1] %v1072_v41 }
 0x1d5 PF: > { %s13_s12 = sadd.s32 1, %s1169_s12  }
 0x1d6   : > { %p10_p5 = scmp.ge.s32.totalorder %s13_s12, 4  }
 0x1d8   :  { %12 = sbr.rel (!%p10_p5) target bundleno = 1 (0x1), region = 65 }

</bundles_post_ra>
